<compile_context>
chip_gen: v7x
topology: tpu7x:2x2x1
jax: 0.10.0
libtpu: 0.0.40
codegen_flags: <defaults>
</compile_context>

<pallas_src>
import math
import numpy as np
import jax
import jax.numpy as jnp
from jax import lax
from jax.experimental import pallas as pl
from jax.experimental.pallas import tpu as pltpu

N_EMBD   = 32
N_HEAD   = 4
HEAD_DIM = N_EMBD // N_HEAD          # 8
FF_HID   = 100
FF_PAD   = 128                       # FFN hidden zero-padded to one full lane tile
SEQ      = 8
BATCH    = 2
LN_EPS   = 1e-5
NEG_INF  = -1e30                     # exp() underflows to 0 -> identical softmax

# The single (32, 32) block-diagonal head mask is reused in three roles; this
# relies on HEAD_DIM == SEQ and N_HEAD * SEQ == N_EMBD (true for these shapes).
assert N_HEAD * HEAD_DIM == N_EMBD
assert SEQ == HEAD_DIM and N_HEAD * SEQ == N_EMBD

_LN_ROWS  = 6                        # rows 0..5   : g1, be1, g2, be2, g3, be3
_BIAS_OFF = _LN_ROWS                 # rows 6..13  : ALiBi + causal bias, (T, H*T)
_MASK_OFF = _LN_ROWS + SEQ           # rows 14..45 : block-diagonal head mask


def decoder_block_kernel(x_ref, w_ref, c_ref, y_ref, attn_ref):
    """Whole decoder block, both batch elements, one invocation.

    x_ref    : (B*T, C)          tokens, batch elements stacked on sublanes
    w_ref    : (4, C+1, 128)     packed weights [attn1 | attn2 | ffn1 | ffn2^T]
    c_ref    : (6+T+H*T, C)      packed constants [LN g/b x3 | alibi | head mask]
    y_ref    : (B, T*C)          lane-dense block output
    attn_ref : (B, T*H*T)        lane-dense masked-attention probabilities
    """
    C, T, H, D, B = N_EMBD, SEQ, N_HEAD, HEAD_DIM, BATCH
    x   = x_ref[...]                                    # (16, 32)
    cst = c_ref[...]                                    # (46, 32)
    scale = 1.0 / math.sqrt(D)

    alibi = cst[_BIAS_OFF:_BIAS_OFF + T, :]             # (T, H*T) slopes/causal -inf
    # head_mask[a, b] = 1 iff a//8 == b//8.  Used both as the (H*T, C)
    # block-diagonal key/value expansion mask and as the (H*T, H*T) per-head
    # row-sum matrix for the softmax denominator.
    head_mask = cst[_MASK_OFF:_MASK_OFF + H * T, :]     # (32, 32)

    def layernorm(h, i):
        g = cst[2 * i:2 * i + 1, :]
        b = cst[2 * i + 1:2 * i + 2, :]
        mu  = jnp.mean(h, axis=-1, keepdims=True)
        var = jnp.mean((h - mu) ** 2, axis=-1, keepdims=True)
        return (h - mu) * lax.rsqrt(var + LN_EPS) * g + b

    def attention(h, widx, masked):
        """Multi-head attention with only plain 2-D matmuls (all heads fused).

        Keys/values are expanded to block-diagonal (H*T, C) form so one matmul
        yields every head's scores side by side along lanes, and one matmul
        with `head_mask` yields the per-head softmax denominators."""
        Wa   = w_ref[widx]                              # (33, 128)
        wqkv = Wa[:C, :3 * C]                           # (32, 96)
        wo   = Wa[:C, 3 * C:]                           # (32, 32)
        bqkv = Wa[C:C + 1, :3 * C]                      # (1, 96)
        bo   = Wa[C:C + 1, 3 * C:]                      # (1, 32)

        qkv = jnp.dot(h, wqkv, preferred_element_type=jnp.float32) + bqkv   # (16, 96)
        q_all, k_all, v_all = qkv[:, :C], qkv[:, C:2 * C], qkv[:, 2 * C:]

        outs, probs = [], []
        for b in range(B):                              # B = 2, unrolled at trace time
            rows = slice(b * T, (b + 1) * T)
            q, k, v = q_all[rows], k_all[rows], v_all[rows]        # (8, 32) each
            k_exp = jnp.concatenate([k] * H, axis=0) * head_mask   # (H*T, C)
            v_exp = jnp.concatenate([v] * H, axis=0) * head_mask   # (H*T, C)
            # scores[i, h*T + j] = <q_h[i], k_h[j]> / sqrt(D)
            s = lax.dot_general(q, k_exp, (((1,), (1,)), ((), ())),
                                preferred_element_type=jnp.float32) * scale
            if masked:
                s = s + alibi                           # ALiBi slopes + causal NEG_INF
            # softmax per head group of T lanes; the shared per-row max is valid
            # (softmax is shift-invariant and it upper-bounds every group max).
            m = jnp.max(s, axis=-1, keepdims=True)
            e = jnp.exp(s - m)
            denom = jnp.dot(e, head_mask, preferred_element_type=jnp.float32)
            p = e / denom            # exact divide: keeps the 1e-4 reference check
            probs.append(p)                                         # (T, H*T)
            outs.append(jnp.dot(p, v_exp, preferred_element_type=jnp.float32))  # (T, C)

        o = jnp.concatenate(outs, axis=0)               # (B*T, C)
        return jnp.dot(o, wo, preferred_element_type=jnp.float32) + bo, probs

    # ---- masked self-attention (ALiBi + causal) ----
    h1 = layernorm(x, 0)
    a1, probs1 = attention(h1, 0, masked=True)
    x1 = x + a1

    # ---- "encoder" attention == unmasked self-attention on LN2(x1) ----
    h2 = layernorm(x1, 1)
    a2, _ = attention(h2, 1, masked=False)
    x2 = x1 + a2

    # ---- feed-forward (hidden zero-padded to 128 lanes) ----
    h3  = layernorm(x2, 2)
    Wf1 = w_ref[2]                                      # (33, 128)
    Wf2 = w_ref[3]                                      # (33, 128), W2 stored transposed
    hid = jnp.maximum(
        jnp.dot(h3, Wf1[:C, :], preferred_element_type=jnp.float32) + Wf1[C:C + 1, :],
        0.0)                                            # (B*T, 128)
    ff = lax.dot_general(hid, Wf2[:C, :], (((1,), (1,)), ((), ())),
                         preferred_element_type=jnp.float32) + Wf2[C:C + 1, :C]
    y = x2 + ff                                         # (B*T, C)

    # ---- lane-dense stores: one unmasked 256-wide row per batch element ----
    def rows_to_lanes(m):                               # (R, N) -> (1, R*N)
        return jnp.concatenate([m[i:i + 1, :] for i in range(m.shape[0])], axis=1)

    y_ref[...] = jnp.concatenate(
        [rows_to_lanes(y[b * T:(b + 1) * T, :]) for b in range(B)], axis=0)
    attn_ref[...] = jnp.concatenate(
        [rows_to_lanes(probs1[b]) for b in range(B)], axis=0)


def pack_params(P, masked_bias):
    """Pack the 26 parameter arrays + constants into two contiguous f32 blobs."""
    C = N_EMBD
    blob = jnp.zeros((4, C + 1, FF_PAD), jnp.float32)

    def pack_attn(blob, idx, pre):
        wqkv = jnp.concatenate([P[f"wq{pre}"], P[f"wk{pre}"], P[f"wv{pre}"]], axis=1)
        bqkv = jnp.concatenate([P[f"bq{pre}"], P[f"bk{pre}"], P[f"bv{pre}"]], axis=1)
        blob = blob.at[idx, :C, :3 * C].set(wqkv)
        blob = blob.at[idx, :C, 3 * C:].set(P[f"wo{pre}"])
        blob = blob.at[idx, C, :3 * C].set(bqkv[0])
        blob = blob.at[idx, C, 3 * C:].set(P[f"bo{pre}"][0])
        return blob

    blob = pack_attn(blob, 0, "1")
    blob = pack_attn(blob, 1, "2")
    # FFN layer 1, zero-padded 100 -> 128 hidden units (ReLU(0) == 0).
    blob = blob.at[2, :C, :FF_HID].set(P["w1"])
    blob = blob.at[2, C, :FF_HID].set(P["b1"][0])
    # FFN layer 2 stored transposed; padded rows are zero -> contribute exactly 0.
    blob = blob.at[3, :C, :FF_HID].set(P["w2"].T)
    blob = blob.at[3, C, :C].set(P["b2"][0])

    # Constants: LN gammas/betas, ALiBi bias rearranged to (T, H*T), head mask.
    bias2 = jnp.transpose(masked_bias, (1, 0, 2)).reshape(SEQ, N_HEAD * SEQ)
    heads = np.arange(N_HEAD * SEQ) // SEQ
    head_mask = jnp.asarray((heads[:, None] == heads[None, :]).astype(np.float32))
    cst = jnp.concatenate(
        [P["g1"], P["be1"], P["g2"], P["be2"], P["g3"], P["be3"], bias2, head_mask],
        axis=0)                                         # (6 + T + H*T, C) = (46, 32)
    return blob, cst


def decoder_block(x, masked_bias, params, encoder_outputs=None):
    """x: (B, T, C).  Returns (y (B,T,C), masked-attn probabilities (B,H,T,T)).
    `encoder_outputs` only gates the branch in the PyTorch module and is never
    consumed by it; it is provided here, so the branch always runs."""
    del encoder_outputs
    B, T, C = x.shape
    w_blob, c_blob = pack_params(params, masked_bias)
    x_flat = x.reshape(B * T, C)

    y_wide, attn_wide = pl.pallas_call(
        decoder_block_kernel,
        out_shape=(
            jax.ShapeDtypeStruct((B, T * C), jnp.float32),
            jax.ShapeDtypeStruct((B, T * N_HEAD * T), jnp.float32),
        ),
        grid_spec=pltpu.PrefetchScalarGridSpec(
            num_scalar_prefetch=0,
            grid=(1,),                                   # batch folded inside the kernel
            in_specs=[
                pl.BlockSpec((B * T, C), lambda i: (0, 0)),
                pl.BlockSpec(w_blob.shape, lambda i: (0, 0, 0)),
                pl.BlockSpec(c_blob.shape, lambda i: (0, 0)),
            ],
            out_specs=(
                pl.BlockSpec((B, T * C), lambda i: (0, 0)),
                pl.BlockSpec((B, T * N_HEAD * T), lambda i: (0, 0)),
            ),
        ),
        compiler_params=pltpu.CompilerParams(dimension_semantics=("arbitrary",)),
    )(x_flat, w_blob, c_blob)

    y = y_wide.reshape(B, T, C)
    attn = attn_wide.reshape(B, T, N_HEAD, T).transpose(0, 2, 1, 3)
    return y, attn


def make_alibi_masked_bias(n_head, seq_len):
    """Reproduces AliBi_decoder: slopes * (j - i) on/below diagonal, -inf above."""
    slopes = jnp.array([1.0 / 2 ** i for i in range(1, n_head + 1)],
                       jnp.float32)[:, None, None]                  # (H,1,1)
    pos = jnp.arange(seq_len, dtype=jnp.float32)
    diff = pos[None, :] - pos[:, None]                              # diff[i,j] = j - i
    causal = jnp.tril(jnp.ones((seq_len, seq_len), jnp.float32))
    bias = slopes * (diff * causal)[None]                           # (H,T,T)
    return jnp.where(causal[None] == 0, NEG_INF, bias)


def reference_forward(x, masked_bias, P):
    """Pure-JAX reference mirroring the PyTorch forward (dropout = identity)."""
    def ln(h, g, b):
        mu = h.mean(-1, keepdims=True)
        var = ((h - mu) ** 2).mean(-1, keepdims=True)
        return (h - mu) / jnp.sqrt(var + LN_EPS) * g + b

    def mha(h, wq, bq, wk, bk, wv, bv, wo, bo, masked):
        B, T, C = h.shape
        q = (h @ wq + bq).reshape(B, T, N_HEAD, HEAD_DIM).transpose(0, 2, 1, 3)
        k = (h @ wk + bk).reshape(B, T, N_HEAD, HEAD_DIM).transpose(0, 2, 1, 3)
        v = (h @ wv + bv).reshape(B, T, N_HEAD, HEAD_DIM).transpose(0, 2, 1, 3)
        s = jnp.einsum("bhqd,bhkd->bhqk", q, k) / math.sqrt(HEAD_DIM)
        if masked:
            s = s + masked_bias[None]
        p = jax.nn.softmax(s, axis=-1)
        o = jnp.einsum("bhqk,bhkd->bhqd", p, v).transpose(0, 2, 1, 3).reshape(B, T, C)
        return o @ wo + bo, p

    h1 = ln(x, P["g1"], P["be1"])
    a1, attn = mha(h1, P["wq1"], P["bq1"], P["wk1"], P["bk1"],
                   P["wv1"], P["bv1"], P["wo1"], P["bo1"], True)
    x1 = x + a1
    h2 = ln(x1, P["g2"], P["be2"])
    a2, _ = mha(h2, P["wq2"], P["bq2"], P["wk2"], P["bk2"],
                P["wv2"], P["bv2"], P["wo2"], P["bo2"], False)
    x2 = x1 + a2
    h3 = ln(x2, P["g3"], P["be3"])
    ff = jnp.maximum(h3 @ P["w1"] + P["b1"], 0.0) @ P["w2"] + P["b2"]
    return x2 + ff, attn


def init_params(key):
    """Deterministic synthetic parameters. Linear stored as (in, out): y = x@W + b."""
    ks = iter(jax.random.split(key, 40))
    def lin(din, dout):
        w = jax.random.normal(next(ks), (din, dout), jnp.float32) * 0.05
        b = jax.random.normal(next(ks), (1, dout), jnp.float32) * 0.05
        return w, b
    P = {}
    for pre in ("1", "2"):
        for nm in ("q", "k", "v", "o"):
            w, b = lin(N_EMBD, N_EMBD)
            P[f"w{nm}{pre}"], P[f"b{nm}{pre}"] = w, b
    P["w1"], P["b1"] = lin(N_EMBD, FF_HID)
    P["w2"], P["b2"] = lin(FF_HID, N_EMBD)
    for i in ("1", "2", "3"):
        P[f"g{i}"] = 1.0 + 0.1 * jax.random.normal(next(ks), (1, N_EMBD), jnp.float32)
        P[f"be{i}"] = 0.1 * jax.random.normal(next(ks), (1, N_EMBD), jnp.float32)
    return P


if __name__ == "__main__":
    key = jax.random.PRNGKey(0)
    kx, kp, ke = jax.random.split(key, 3)
    x = jax.random.normal(kx, (BATCH, SEQ, N_EMBD), jnp.float32)
    encoder_outputs = jax.random.normal(ke, (BATCH, SEQ, N_EMBD), jnp.float32)  # unused by module
    params = init_params(kp)
    masked_bias = make_alibi_masked_bias(N_HEAD, SEQ)

    y, attn = decoder_block(x, masked_bias, params, encoder_outputs)
    y = jax.block_until_ready(y)
    attn = jax.block_until_ready(attn)

    y_ref, attn_ref = reference_forward(x, masked_bias, params)
    np.testing.assert_allclose(np.asarray(y), np.asarray(y_ref), rtol=1e-4, atol=1e-4)
    np.testing.assert_allclose(np.asarray(attn), np.asarray(attn_ref), rtol=1e-4, atol=1e-4)

    print("KERNEL_OK")
</pallas_src>

<mosaic_0001>
module attributes {stable_mosaic.version = 11 : i64} {
  func.func @decoder_block_kernel(%arg0: i32, %arg1: memref<16x32xf32, #tpu.memory_space<vmem>>, %arg2: memref<4x33x128xf32, #tpu.memory_space<vmem>>, %arg3: memref<46x32xf32, #tpu.memory_space<vmem>>, %arg4: memref<2x256xf32, #tpu.memory_space<vmem>>, %arg5: memref<2x256xf32, #tpu.memory_space<vmem>>) attributes {dimension_semantics = [#tpu.dimension_semantics<arbitrary>], iteration_bounds = array<i64: 1>, scalar_prefetch = 0 : i64, scratch_operands = 0 : i64, tpu.core_type = #tpu.core_type<tc>, window_params = [{pipeline_mode = #tpu.pipeline_mode<synchronous>, transform_indices = @transform_0, window_bounds = array<i64: 16, 32>}, {pipeline_mode = #tpu.pipeline_mode<synchronous>, transform_indices = @transform_1, window_bounds = array<i64: 4, 33, 128>}, {pipeline_mode = #tpu.pipeline_mode<synchronous>, transform_indices = @transform_2, window_bounds = array<i64: 46, 32>}, {pipeline_mode = #tpu.pipeline_mode<synchronous>, transform_indices = @transform_3, window_bounds = array<i64: 2, 256>}, {pipeline_mode = #tpu.pipeline_mode<synchronous>, transform_indices = @transform_4, window_bounds = array<i64: 2, 256>}]} {
    %c0 = arith.constant 0 : index
    %c0_0 = arith.constant 0 : index
    %0 = vector.load %arg1[%c0, %c0_0] : memref<16x32xf32, #tpu.memory_space<vmem>>, vector<16x32xf32>
    %c0_1 = arith.constant 0 : index
    %c0_2 = arith.constant 0 : index
    %1 = vector.load %arg3[%c0_1, %c0_2] : memref<46x32xf32, #tpu.memory_space<vmem>>, vector<46x32xf32>
    %2 = vector.extract_strided_slice %1 {offsets = [6, 0], sizes = [8, 32], strides = [1, 1]} : vector<46x32xf32> to vector<8x32xf32>
    %3 = vector.extract_strided_slice %1 {offsets = [14, 0], sizes = [32, 32], strides = [1, 1]} : vector<46x32xf32> to vector<32x32xf32>
    %4 = vector.extract_strided_slice %1 {offsets = [0, 0], sizes = [1, 32], strides = [1, 1]} : vector<46x32xf32> to vector<1x32xf32>
    %5 = vector.extract_strided_slice %1 {offsets = [1, 0], sizes = [1, 32], strides = [1, 1]} : vector<46x32xf32> to vector<1x32xf32>
    %cst = arith.constant dense<0.000000e+00> : vector<16xf32>
    %6 = vector.multi_reduction <add>, %0, %cst [1] : vector<16x32xf32> to vector<16xf32>
    %7 = vector.shape_cast %6 : vector<16xf32> to vector<16x1xf32>
    %cst_3 = arith.constant 3.200000e+01 : f32
    %8 = vector.broadcast %cst_3 : f32 to vector<16x1xf32>
    %9 = arith.divf %7, %8 : vector<16x1xf32>
    %10 = vector.broadcast %9 : vector<16x1xf32> to vector<16x32xf32>
    %11 = arith.subf %0, %10 : vector<16x32xf32>
    %12 = arith.mulf %11, %11 : vector<16x32xf32>
    %cst_4 = arith.constant dense<0.000000e+00> : vector<16xf32>
    %13 = vector.multi_reduction <add>, %12, %cst_4 [1] : vector<16x32xf32> to vector<16xf32>
    %14 = vector.shape_cast %13 : vector<16xf32> to vector<16x1xf32>
    %cst_5 = arith.constant 3.200000e+01 : f32
    %15 = vector.broadcast %cst_5 : f32 to vector<16x1xf32>
    %16 = arith.divf %14, %15 : vector<16x1xf32>
    %17 = vector.broadcast %9 : vector<16x1xf32> to vector<16x32xf32>
    %18 = arith.subf %0, %17 : vector<16x32xf32>
    %cst_6 = arith.constant 9.99999974E-6 : f32
    %19 = vector.broadcast %cst_6 : f32 to vector<16x1xf32>
    %20 = arith.addf %16, %19 : vector<16x1xf32>
    %21 = math.rsqrt %20 : vector<16x1xf32>
    %22 = vector.broadcast %21 : vector<16x1xf32> to vector<16x32xf32>
    %23 = arith.mulf %18, %22 : vector<16x32xf32>
    %24 = vector.broadcast %4 : vector<1x32xf32> to vector<16x32xf32>
    %25 = arith.mulf %23, %24 : vector<16x32xf32>
    %26 = vector.broadcast %5 : vector<1x32xf32> to vector<16x32xf32>
    %27 = arith.addf %25, %26 : vector<16x32xf32>
    %c0_7 = arith.constant 0 : index
    %c0_8 = arith.constant 0 : index
    %c0_9 = arith.constant 0 : index
    %28 = vector.load %arg2[%c0_7, %c0_8, %c0_9] : memref<4x33x128xf32, #tpu.memory_space<vmem>>, vector<1x33x128xf32>
    %29 = vector.shape_cast %28 : vector<1x33x128xf32> to vector<33x128xf32>
    %30 = vector.extract_strided_slice %29 {offsets = [0, 0], sizes = [32, 96], strides = [1, 1]} : vector<33x128xf32> to vector<32x96xf32>
    %31 = vector.extract_strided_slice %29 {offsets = [0, 96], sizes = [32, 32], strides = [1, 1]} : vector<33x128xf32> to vector<32x32xf32>
    %32 = vector.extract_strided_slice %29 {offsets = [32, 0], sizes = [1, 96], strides = [1, 1]} : vector<33x128xf32> to vector<1x96xf32>
    %33 = vector.extract_strided_slice %29 {offsets = [32, 96], sizes = [1, 32], strides = [1, 1]} : vector<33x128xf32> to vector<1x32xf32>
    %cst_10 = arith.constant dense<0.000000e+00> : vector<16x96xf32>
    %34 = tpu.matmul %27, %30, %cst_10 {dimension_numbers = #tpu.dot_dimension_numbers<[1], [0], [0], [1], [0, 0, 1, 1], [], []>} : vector<16x32xf32>, vector<32x96xf32>, vector<16x96xf32> -> vector<16x96xf32>
    %35 = vector.broadcast %32 : vector<1x96xf32> to vector<16x96xf32>
    %36 = arith.addf %34, %35 : vector<16x96xf32>
    %37 = vector.extract_strided_slice %36 {offsets = [0, 0], sizes = [16, 32], strides = [1, 1]} : vector<16x96xf32> to vector<16x32xf32>
    %38 = vector.extract_strided_slice %36 {offsets = [0, 32], sizes = [16, 32], strides = [1, 1]} : vector<16x96xf32> to vector<16x32xf32>
    %39 = vector.extract_strided_slice %36 {offsets = [0, 64], sizes = [16, 32], strides = [1, 1]} : vector<16x96xf32> to vector<16x32xf32>
    %40 = vector.extract_strided_slice %37 {offsets = [0, 0], sizes = [8, 32], strides = [1, 1]} : vector<16x32xf32> to vector<8x32xf32>
    %41 = vector.extract_strided_slice %38 {offsets = [0, 0], sizes = [8, 32], strides = [1, 1]} : vector<16x32xf32> to vector<8x32xf32>
    %42 = vector.extract_strided_slice %39 {offsets = [0, 0], sizes = [8, 32], strides = [1, 1]} : vector<16x32xf32> to vector<8x32xf32>
    %43 = tpu.concatenate %41, %41, %41, %41 in 0 : vector<8x32xf32>, vector<8x32xf32>, vector<8x32xf32>, vector<8x32xf32> -> vector<32x32xf32>
    %44 = arith.mulf %43, %3 : vector<32x32xf32>
    %45 = tpu.concatenate %42, %42, %42, %42 in 0 : vector<8x32xf32>, vector<8x32xf32>, vector<8x32xf32>, vector<8x32xf32> -> vector<32x32xf32>
    %46 = arith.mulf %45, %3 : vector<32x32xf32>
    %cst_11 = arith.constant dense<0.000000e+00> : vector<8x32xf32>
    %47 = tpu.matmul %40, %44, %cst_11 {dimension_numbers = #tpu.dot_dimension_numbers<[1], [1], [0], [0], [0, 0, 1, 0], [], []>} : vector<8x32xf32>, vector<32x32xf32>, vector<8x32xf32> -> vector<8x32xf32>
    %cst_12 = arith.constant 0.353553385 : f32
    %48 = vector.broadcast %cst_12 : f32 to vector<8x32xf32>
    %49 = arith.mulf %47, %48 : vector<8x32xf32>
    %50 = arith.addf %49, %2 : vector<8x32xf32>
    %cst_13 = arith.constant dense<0xFF800000> : vector<8xf32>
    %51 = vector.multi_reduction <maximumf>, %50, %cst_13 [1] : vector<8x32xf32> to vector<8xf32>
    %52 = vector.shape_cast %51 : vector<8xf32> to vector<8x1xf32>
    %53 = vector.broadcast %52 : vector<8x1xf32> to vector<8x32xf32>
    %54 = arith.subf %50, %53 : vector<8x32xf32>
    %55 = math.exp %54 : vector<8x32xf32>
    %cst_14 = arith.constant dense<0.000000e+00> : vector<8x32xf32>
    %56 = tpu.matmul %55, %3, %cst_14 {dimension_numbers = #tpu.dot_dimension_numbers<[1], [0], [0], [1], [0, 0, 1, 1], [], []>} : vector<8x32xf32>, vector<32x32xf32>, vector<8x32xf32> -> vector<8x32xf32>
    %57 = arith.divf %55, %56 : vector<8x32xf32>
    %cst_15 = arith.constant dense<0.000000e+00> : vector<8x32xf32>
    %58 = tpu.matmul %57, %46, %cst_15 {dimension_numbers = #tpu.dot_dimension_numbers<[1], [0], [0], [1], [0, 0, 1, 1], [], []>} : vector<8x32xf32>, vector<32x32xf32>, vector<8x32xf32> -> vector<8x32xf32>
    %59 = vector.extract_strided_slice %37 {offsets = [8, 0], sizes = [8, 32], strides = [1, 1]} : vector<16x32xf32> to vector<8x32xf32>
    %60 = vector.extract_strided_slice %38 {offsets = [8, 0], sizes = [8, 32], strides = [1, 1]} : vector<16x32xf32> to vector<8x32xf32>
    %61 = vector.extract_strided_slice %39 {offsets = [8, 0], sizes = [8, 32], strides = [1, 1]} : vector<16x32xf32> to vector<8x32xf32>
    %62 = tpu.concatenate %60, %60, %60, %60 in 0 : vector<8x32xf32>, vector<8x32xf32>, vector<8x32xf32>, vector<8x32xf32> -> vector<32x32xf32>
    %63 = arith.mulf %62, %3 : vector<32x32xf32>
    %64 = tpu.concatenate %61, %61, %61, %61 in 0 : vector<8x32xf32>, vector<8x32xf32>, vector<8x32xf32>, vector<8x32xf32> -> vector<32x32xf32>
    %65 = arith.mulf %64, %3 : vector<32x32xf32>
    %cst_16 = arith.constant dense<0.000000e+00> : vector<8x32xf32>
    %66 = tpu.matmul %59, %63, %cst_16 {dimension_numbers = #tpu.dot_dimension_numbers<[1], [1], [0], [0], [0, 0, 1, 0], [], []>} : vector<8x32xf32>, vector<32x32xf32>, vector<8x32xf32> -> vector<8x32xf32>
    %cst_17 = arith.constant 0.353553385 : f32
    %67 = vector.broadcast %cst_17 : f32 to vector<8x32xf32>
    %68 = arith.mulf %66, %67 : vector<8x32xf32>
    %69 = arith.addf %68, %2 : vector<8x32xf32>
    %cst_18 = arith.constant dense<0xFF800000> : vector<8xf32>
    %70 = vector.multi_reduction <maximumf>, %69, %cst_18 [1] : vector<8x32xf32> to vector<8xf32>
    %71 = vector.shape_cast %70 : vector<8xf32> to vector<8x1xf32>
    %72 = vector.broadcast %71 : vector<8x1xf32> to vector<8x32xf32>
    %73 = arith.subf %69, %72 : vector<8x32xf32>
    %74 = math.exp %73 : vector<8x32xf32>
    %cst_19 = arith.constant dense<0.000000e+00> : vector<8x32xf32>
    %75 = tpu.matmul %74, %3, %cst_19 {dimension_numbers = #tpu.dot_dimension_numbers<[1], [0], [0], [1], [0, 0, 1, 1], [], []>} : vector<8x32xf32>, vector<32x32xf32>, vector<8x32xf32> -> vector<8x32xf32>
    %76 = arith.divf %74, %75 : vector<8x32xf32>
    %cst_20 = arith.constant dense<0.000000e+00> : vector<8x32xf32>
    %77 = tpu.matmul %76, %65, %cst_20 {dimension_numbers = #tpu.dot_dimension_numbers<[1], [0], [0], [1], [0, 0, 1, 1], [], []>} : vector<8x32xf32>, vector<32x32xf32>, vector<8x32xf32> -> vector<8x32xf32>
    %78 = tpu.concatenate %58, %77 in 0 : vector<8x32xf32>, vector<8x32xf32> -> vector<16x32xf32>
    %cst_21 = arith.constant dense<0.000000e+00> : vector<16x32xf32>
    %79 = tpu.matmul %78, %31, %cst_21 {dimension_numbers = #tpu.dot_dimension_numbers<[1], [0], [0], [1], [0, 0, 1, 1], [], []>} : vector<16x32xf32>, vector<32x32xf32>, vector<16x32xf32> -> vector<16x32xf32>
    %80 = vector.broadcast %33 : vector<1x32xf32> to vector<16x32xf32>
    %81 = arith.addf %79, %80 : vector<16x32xf32>
    %82 = arith.addf %0, %81 : vector<16x32xf32>
    %83 = vector.extract_strided_slice %1 {offsets = [2, 0], sizes = [1, 32], strides = [1, 1]} : vector<46x32xf32> to vector<1x32xf32>
    %84 = vector.extract_strided_slice %1 {offsets = [3, 0], sizes = [1, 32], strides = [1, 1]} : vector<46x32xf32> to vector<1x32xf32>
    %cst_22 = arith.constant dense<0.000000e+00> : vector<16xf32>
    %85 = vector.multi_reduction <add>, %82, %cst_22 [1] : vector<16x32xf32> to vector<16xf32>
    %86 = vector.shape_cast %85 : vector<16xf32> to vector<16x1xf32>
    %cst_23 = arith.constant 3.200000e+01 : f32
    %87 = vector.broadcast %cst_23 : f32 to vector<16x1xf32>
    %88 = arith.divf %86, %87 : vector<16x1xf32>
    %89 = vector.broadcast %88 : vector<16x1xf32> to vector<16x32xf32>
    %90 = arith.subf %82, %89 : vector<16x32xf32>
    %91 = arith.mulf %90, %90 : vector<16x32xf32>
    %cst_24 = arith.constant dense<0.000000e+00> : vector<16xf32>
    %92 = vector.multi_reduction <add>, %91, %cst_24 [1] : vector<16x32xf32> to vector<16xf32>
    %93 = vector.shape_cast %92 : vector<16xf32> to vector<16x1xf32>
    %cst_25 = arith.constant 3.200000e+01 : f32
    %94 = vector.broadcast %cst_25 : f32 to vector<16x1xf32>
    %95 = arith.divf %93, %94 : vector<16x1xf32>
    %96 = vector.broadcast %88 : vector<16x1xf32> to vector<16x32xf32>
    %97 = arith.subf %82, %96 : vector<16x32xf32>
    %cst_26 = arith.constant 9.99999974E-6 : f32
    %98 = vector.broadcast %cst_26 : f32 to vector<16x1xf32>
    %99 = arith.addf %95, %98 : vector<16x1xf32>
    %100 = math.rsqrt %99 : vector<16x1xf32>
    %101 = vector.broadcast %100 : vector<16x1xf32> to vector<16x32xf32>
    %102 = arith.mulf %97, %101 : vector<16x32xf32>
    %103 = vector.broadcast %83 : vector<1x32xf32> to vector<16x32xf32>
    %104 = arith.mulf %102, %103 : vector<16x32xf32>
    %105 = vector.broadcast %84 : vector<1x32xf32> to vector<16x32xf32>
    %106 = arith.addf %104, %105 : vector<16x32xf32>
    %c1 = arith.constant 1 : index
    %c0_27 = arith.constant 0 : index
    %c0_28 = arith.constant 0 : index
    %107 = vector.load %arg2[%c1, %c0_27, %c0_28] : memref<4x33x128xf32, #tpu.memory_space<vmem>>, vector<1x33x128xf32>
    %108 = vector.shape_cast %107 : vector<1x33x128xf32> to vector<33x128xf32>
    %109 = vector.extract_strided_slice %108 {offsets = [0, 0], sizes = [32, 96], strides = [1, 1]} : vector<33x128xf32> to vector<32x96xf32>
    %110 = vector.extract_strided_slice %108 {offsets = [0, 96], sizes = [32, 32], strides = [1, 1]} : vector<33x128xf32> to vector<32x32xf32>
    %111 = vector.extract_strided_slice %108 {offsets = [32, 0], sizes = [1, 96], strides = [1, 1]} : vector<33x128xf32> to vector<1x96xf32>
    %112 = vector.extract_strided_slice %108 {offsets = [32, 96], sizes = [1, 32], strides = [1, 1]} : vector<33x128xf32> to vector<1x32xf32>
    %cst_29 = arith.constant dense<0.000000e+00> : vector<16x96xf32>
    %113 = tpu.matmul %106, %109, %cst_29 {dimension_numbers = #tpu.dot_dimension_numbers<[1], [0], [0], [1], [0, 0, 1, 1], [], []>} : vector<16x32xf32>, vector<32x96xf32>, vector<16x96xf32> -> vector<16x96xf32>
    %114 = vector.broadcast %111 : vector<1x96xf32> to vector<16x96xf32>
    %115 = arith.addf %113, %114 : vector<16x96xf32>
    %116 = vector.extract_strided_slice %115 {offsets = [0, 0], sizes = [16, 32], strides = [1, 1]} : vector<16x96xf32> to vector<16x32xf32>
    %117 = vector.extract_strided_slice %115 {offsets = [0, 32], sizes = [16, 32], strides = [1, 1]} : vector<16x96xf32> to vector<16x32xf32>
    %118 = vector.extract_strided_slice %115 {offsets = [0, 64], sizes = [16, 32], strides = [1, 1]} : vector<16x96xf32> to vector<16x32xf32>
    %119 = vector.extract_strided_slice %116 {offsets = [0, 0], sizes = [8, 32], strides = [1, 1]} : vector<16x32xf32> to vector<8x32xf32>
    %120 = vector.extract_strided_slice %117 {offsets = [0, 0], sizes = [8, 32], strides = [1, 1]} : vector<16x32xf32> to vector<8x32xf32>
    %121 = vector.extract_strided_slice %118 {offsets = [0, 0], sizes = [8, 32], strides = [1, 1]} : vector<16x32xf32> to vector<8x32xf32>
    %122 = tpu.concatenate %120, %120, %120, %120 in 0 : vector<8x32xf32>, vector<8x32xf32>, vector<8x32xf32>, vector<8x32xf32> -> vector<32x32xf32>
    %123 = arith.mulf %122, %3 : vector<32x32xf32>
    %124 = tpu.concatenate %121, %121, %121, %121 in 0 : vector<8x32xf32>, vector<8x32xf32>, vector<8x32xf32>, vector<8x32xf32> -> vector<32x32xf32>
    %125 = arith.mulf %124, %3 : vector<32x32xf32>
    %cst_30 = arith.constant dense<0.000000e+00> : vector<8x32xf32>
    %126 = tpu.matmul %119, %123, %cst_30 {dimension_numbers = #tpu.dot_dimension_numbers<[1], [1], [0], [0], [0, 0, 1, 0], [], []>} : vector<8x32xf32>, vector<32x32xf32>, vector<8x32xf32> -> vector<8x32xf32>
    %cst_31 = arith.constant 0.353553385 : f32
    %127 = vector.broadcast %cst_31 : f32 to vector<8x32xf32>
    %128 = arith.mulf %126, %127 : vector<8x32xf32>
    %cst_32 = arith.constant dense<0xFF800000> : vector<8xf32>
    %129 = vector.multi_reduction <maximumf>, %128, %cst_32 [1] : vector<8x32xf32> to vector<8xf32>
    %130 = vector.shape_cast %129 : vector<8xf32> to vector<8x1xf32>
    %131 = vector.broadcast %130 : vector<8x1xf32> to vector<8x32xf32>
    %132 = arith.subf %128, %131 : vector<8x32xf32>
    %133 = math.exp %132 : vector<8x32xf32>
    %cst_33 = arith.constant dense<0.000000e+00> : vector<8x32xf32>
    %134 = tpu.matmul %133, %3, %cst_33 {dimension_numbers = #tpu.dot_dimension_numbers<[1], [0], [0], [1], [0, 0, 1, 1], [], []>} : vector<8x32xf32>, vector<32x32xf32>, vector<8x32xf32> -> vector<8x32xf32>
    %135 = arith.divf %133, %134 : vector<8x32xf32>
    %cst_34 = arith.constant dense<0.000000e+00> : vector<8x32xf32>
    %136 = tpu.matmul %135, %125, %cst_34 {dimension_numbers = #tpu.dot_dimension_numbers<[1], [0], [0], [1], [0, 0, 1, 1], [], []>} : vector<8x32xf32>, vector<32x32xf32>, vector<8x32xf32> -> vector<8x32xf32>
    %137 = vector.extract_strided_slice %116 {offsets = [8, 0], sizes = [8, 32], strides = [1, 1]} : vector<16x32xf32> to vector<8x32xf32>
    %138 = vector.extract_strided_slice %117 {offsets = [8, 0], sizes = [8, 32], strides = [1, 1]} : vector<16x32xf32> to vector<8x32xf32>
    %139 = vector.extract_strided_slice %118 {offsets = [8, 0], sizes = [8, 32], strides = [1, 1]} : vector<16x32xf32> to vector<8x32xf32>
    %140 = tpu.concatenate %138, %138, %138, %138 in 0 : vector<8x32xf32>, vector<8x32xf32>, vector<8x32xf32>, vector<8x32xf32> -> vector<32x32xf32>
    %141 = arith.mulf %140, %3 : vector<32x32xf32>
    %142 = tpu.concatenate %139, %139, %139, %139 in 0 : vector<8x32xf32>, vector<8x32xf32>, vector<8x32xf32>, vector<8x32xf32> -> vector<32x32xf32>
    %143 = arith.mulf %142, %3 : vector<32x32xf32>
    %cst_35 = arith.constant dense<0.000000e+00> : vector<8x32xf32>
    %144 = tpu.matmul %137, %141, %cst_35 {dimension_numbers = #tpu.dot_dimension_numbers<[1], [1], [0], [0], [0, 0, 1, 0], [], []>} : vector<8x32xf32>, vector<32x32xf32>, vector<8x32xf32> -> vector<8x32xf32>
    %cst_36 = arith.constant 0.353553385 : f32
    %145 = vector.broadcast %cst_36 : f32 to vector<8x32xf32>
    %146 = arith.mulf %144, %145 : vector<8x32xf32>
    %cst_37 = arith.constant dense<0xFF800000> : vector<8xf32>
    %147 = vector.multi_reduction <maximumf>, %146, %cst_37 [1] : vector<8x32xf32> to vector<8xf32>
    %148 = vector.shape_cast %147 : vector<8xf32> to vector<8x1xf32>
    %149 = vector.broadcast %148 : vector<8x1xf32> to vector<8x32xf32>
    %150 = arith.subf %146, %149 : vector<8x32xf32>
    %151 = math.exp %150 : vector<8x32xf32>
    %cst_38 = arith.constant dense<0.000000e+00> : vector<8x32xf32>
    %152 = tpu.matmul %151, %3, %cst_38 {dimension_numbers = #tpu.dot_dimension_numbers<[1], [0], [0], [1], [0, 0, 1, 1], [], []>} : vector<8x32xf32>, vector<32x32xf32>, vector<8x32xf32> -> vector<8x32xf32>
    %153 = arith.divf %151, %152 : vector<8x32xf32>
    %cst_39 = arith.constant dense<0.000000e+00> : vector<8x32xf32>
    %154 = tpu.matmul %153, %143, %cst_39 {dimension_numbers = #tpu.dot_dimension_numbers<[1], [0], [0], [1], [0, 0, 1, 1], [], []>} : vector<8x32xf32>, vector<32x32xf32>, vector<8x32xf32> -> vector<8x32xf32>
    %155 = tpu.concatenate %136, %154 in 0 : vector<8x32xf32>, vector<8x32xf32> -> vector<16x32xf32>
    %cst_40 = arith.constant dense<0.000000e+00> : vector<16x32xf32>
    %156 = tpu.matmul %155, %110, %cst_40 {dimension_numbers = #tpu.dot_dimension_numbers<[1], [0], [0], [1], [0, 0, 1, 1], [], []>} : vector<16x32xf32>, vector<32x32xf32>, vector<16x32xf32> -> vector<16x32xf32>
    %157 = vector.broadcast %112 : vector<1x32xf32> to vector<16x32xf32>
    %158 = arith.addf %156, %157 : vector<16x32xf32>
    %159 = arith.addf %82, %158 : vector<16x32xf32>
    %160 = vector.extract_strided_slice %1 {offsets = [4, 0], sizes = [1, 32], strides = [1, 1]} : vector<46x32xf32> to vector<1x32xf32>
    %161 = vector.extract_strided_slice %1 {offsets = [5, 0], sizes = [1, 32], strides = [1, 1]} : vector<46x32xf32> to vector<1x32xf32>
    %cst_41 = arith.constant dense<0.000000e+00> : vector<16xf32>
    %162 = vector.multi_reduction <add>, %159, %cst_41 [1] : vector<16x32xf32> to vector<16xf32>
    %163 = vector.shape_cast %162 : vector<16xf32> to vector<16x1xf32>
    %cst_42 = arith.constant 3.200000e+01 : f32
    %164 = vector.broadcast %cst_42 : f32 to vector<16x1xf32>
    %165 = arith.divf %163, %164 : vector<16x1xf32>
    %166 = vector.broadcast %165 : vector<16x1xf32> to vector<16x32xf32>
    %167 = arith.subf %159, %166 : vector<16x32xf32>
    %168 = arith.mulf %167, %167 : vector<16x32xf32>
    %cst_43 = arith.constant dense<0.000000e+00> : vector<16xf32>
    %169 = vector.multi_reduction <add>, %168, %cst_43 [1] : vector<16x32xf32> to vector<16xf32>
    %170 = vector.shape_cast %169 : vector<16xf32> to vector<16x1xf32>
    %cst_44 = arith.constant 3.200000e+01 : f32
    %171 = vector.broadcast %cst_44 : f32 to vector<16x1xf32>
    %172 = arith.divf %170, %171 : vector<16x1xf32>
    %173 = vector.broadcast %165 : vector<16x1xf32> to vector<16x32xf32>
    %174 = arith.subf %159, %173 : vector<16x32xf32>
    %cst_45 = arith.constant 9.99999974E-6 : f32
    %175 = vector.broadcast %cst_45 : f32 to vector<16x1xf32>
    %176 = arith.addf %172, %175 : vector<16x1xf32>
    %177 = math.rsqrt %176 : vector<16x1xf32>
    %178 = vector.broadcast %177 : vector<16x1xf32> to vector<16x32xf32>
    %179 = arith.mulf %174, %178 : vector<16x32xf32>
    %180 = vector.broadcast %160 : vector<1x32xf32> to vector<16x32xf32>
    %181 = arith.mulf %179, %180 : vector<16x32xf32>
    %182 = vector.broadcast %161 : vector<1x32xf32> to vector<16x32xf32>
    %183 = arith.addf %181, %182 : vector<16x32xf32>
    %c2 = arith.constant 2 : index
    %c0_46 = arith.constant 0 : index
    %c0_47 = arith.constant 0 : index
    %184 = vector.load %arg2[%c2, %c0_46, %c0_47] : memref<4x33x128xf32, #tpu.memory_space<vmem>>, vector<1x33x128xf32>
    %185 = vector.shape_cast %184 : vector<1x33x128xf32> to vector<33x128xf32>
    %c3 = arith.constant 3 : index
    %c0_48 = arith.constant 0 : index
    %c0_49 = arith.constant 0 : index
    %186 = vector.load %arg2[%c3, %c0_48, %c0_49] : memref<4x33x128xf32, #tpu.memory_space<vmem>>, vector<1x33x128xf32>
    %187 = vector.shape_cast %186 : vector<1x33x128xf32> to vector<33x128xf32>
    %188 = vector.extract_strided_slice %185 {offsets = [0, 0], sizes = [32, 128], strides = [1, 1]} : vector<33x128xf32> to vector<32x128xf32>
    %cst_50 = arith.constant dense<0.000000e+00> : vector<16x128xf32>
    %189 = tpu.matmul %183, %188, %cst_50 {dimension_numbers = #tpu.dot_dimension_numbers<[1], [0], [0], [1], [0, 0, 1, 1], [], []>} : vector<16x32xf32>, vector<32x128xf32>, vector<16x128xf32> -> vector<16x128xf32>
    %190 = vector.extract_strided_slice %185 {offsets = [32, 0], sizes = [1, 128], strides = [1, 1]} : vector<33x128xf32> to vector<1x128xf32>
    %191 = vector.broadcast %190 : vector<1x128xf32> to vector<16x128xf32>
    %192 = arith.addf %189, %191 : vector<16x128xf32>
    %cst_51 = arith.constant 0.000000e+00 : f32
    %193 = vector.broadcast %cst_51 : f32 to vector<16x128xf32>
    %194 = arith.maximumf %192, %193 : vector<16x128xf32>
    %195 = vector.extract_strided_slice %187 {offsets = [0, 0], sizes = [32, 128], strides = [1, 1]} : vector<33x128xf32> to vector<32x128xf32>
    %cst_52 = arith.constant dense<0.000000e+00> : vector<16x32xf32>
    %196 = tpu.matmul %194, %195, %cst_52 {dimension_numbers = #tpu.dot_dimension_numbers<[1], [1], [0], [0], [0, 0, 1, 0], [], []>} : vector<16x128xf32>, vector<32x128xf32>, vector<16x32xf32> -> vector<16x32xf32>
    %197 = vector.extract_strided_slice %187 {offsets = [32, 0], sizes = [1, 32], strides = [1, 1]} : vector<33x128xf32> to vector<1x32xf32>
    %198 = vector.broadcast %197 : vector<1x32xf32> to vector<16x32xf32>
    %199 = arith.addf %196, %198 : vector<16x32xf32>
    %200 = arith.addf %159, %199 : vector<16x32xf32>
    %201 = vector.extract_strided_slice %200 {offsets = [0, 0], sizes = [8, 32], strides = [1, 1]} : vector<16x32xf32> to vector<8x32xf32>
    %202 = vector.extract_strided_slice %201 {offsets = [0, 0], sizes = [1, 32], strides = [1, 1]} : vector<8x32xf32> to vector<1x32xf32>
    %203 = vector.extract_strided_slice %201 {offsets = [1, 0], sizes = [1, 32], strides = [1, 1]} : vector<8x32xf32> to vector<1x32xf32>
    %204 = vector.extract_strided_slice %201 {offsets = [2, 0], sizes = [1, 32], strides = [1, 1]} : vector<8x32xf32> to vector<1x32xf32>
    %205 = vector.extract_strided_slice %201 {offsets = [3, 0], sizes = [1, 32], strides = [1, 1]} : vector<8x32xf32> to vector<1x32xf32>
    %206 = vector.extract_strided_slice %201 {offsets = [4, 0], sizes = [1, 32], strides = [1, 1]} : vector<8x32xf32> to vector<1x32xf32>
    %207 = vector.extract_strided_slice %201 {offsets = [5, 0], sizes = [1, 32], strides = [1, 1]} : vector<8x32xf32> to vector<1x32xf32>
    %208 = vector.extract_strided_slice %201 {offsets = [6, 0], sizes = [1, 32], strides = [1, 1]} : vector<8x32xf32> to vector<1x32xf32>
    %209 = vector.extract_strided_slice %201 {offsets = [7, 0], sizes = [1, 32], strides = [1, 1]} : vector<8x32xf32> to vector<1x32xf32>
    %210 = tpu.concatenate %202, %203, %204, %205, %206, %207, %208, %209 in 1 : vector<1x32xf32>, vector<1x32xf32>, vector<1x32xf32>, vector<1x32xf32>, vector<1x32xf32>, vector<1x32xf32>, vector<1x32xf32>, vector<1x32xf32> -> vector<1x256xf32>
    %211 = vector.extract_strided_slice %200 {offsets = [8, 0], sizes = [8, 32], strides = [1, 1]} : vector<16x32xf32> to vector<8x32xf32>
    %212 = vector.extract_strided_slice %211 {offsets = [0, 0], sizes = [1, 32], strides = [1, 1]} : vector<8x32xf32> to vector<1x32xf32>
    %213 = vector.extract_strided_slice %211 {offsets = [1, 0], sizes = [1, 32], strides = [1, 1]} : vector<8x32xf32> to vector<1x32xf32>
    %214 = vector.extract_strided_slice %211 {offsets = [2, 0], sizes = [1, 32], strides = [1, 1]} : vector<8x32xf32> to vector<1x32xf32>
    %215 = vector.extract_strided_slice %211 {offsets = [3, 0], sizes = [1, 32], strides = [1, 1]} : vector<8x32xf32> to vector<1x32xf32>
    %216 = vector.extract_strided_slice %211 {offsets = [4, 0], sizes = [1, 32], strides = [1, 1]} : vector<8x32xf32> to vector<1x32xf32>
    %217 = vector.extract_strided_slice %211 {offsets = [5, 0], sizes = [1, 32], strides = [1, 1]} : vector<8x32xf32> to vector<1x32xf32>
    %218 = vector.extract_strided_slice %211 {offsets = [6, 0], sizes = [1, 32], strides = [1, 1]} : vector<8x32xf32> to vector<1x32xf32>
    %219 = vector.extract_strided_slice %211 {offsets = [7, 0], sizes = [1, 32], strides = [1, 1]} : vector<8x32xf32> to vector<1x32xf32>
    %220 = tpu.concatenate %212, %213, %214, %215, %216, %217, %218, %219 in 1 : vector<1x32xf32>, vector<1x32xf32>, vector<1x32xf32>, vector<1x32xf32>, vector<1x32xf32>, vector<1x32xf32>, vector<1x32xf32>, vector<1x32xf32> -> vector<1x256xf32>
    %221 = tpu.concatenate %210, %220 in 0 : vector<1x256xf32>, vector<1x256xf32> -> vector<2x256xf32>
    %c0_53 = arith.constant 0 : index
    %c0_54 = arith.constant 0 : index
    %222 = vector.load %arg4[%c0_53, %c0_54] : memref<2x256xf32, #tpu.memory_space<vmem>>, vector<2x256xf32>
    tpu.vector_store %arg4[%c0_53, %c0_54], %221 {strides = array<i32>} : memref<2x256xf32, #tpu.memory_space<vmem>>, vector<2x256xf32>,
    %223 = vector.extract_strided_slice %57 {offsets = [0, 0], sizes = [1, 32], strides = [1, 1]} : vector<8x32xf32> to vector<1x32xf32>
    %224 = vector.extract_strided_slice %57 {offsets = [1, 0], sizes = [1, 32], strides = [1, 1]} : vector<8x32xf32> to vector<1x32xf32>
    %225 = vector.extract_strided_slice %57 {offsets = [2, 0], sizes = [1, 32], strides = [1, 1]} : vector<8x32xf32> to vector<1x32xf32>
    %226 = vector.extract_strided_slice %57 {offsets = [3, 0], sizes = [1, 32], strides = [1, 1]} : vector<8x32xf32> to vector<1x32xf32>
    %227 = vector.extract_strided_slice %57 {offsets = [4, 0], sizes = [1, 32], strides = [1, 1]} : vector<8x32xf32> to vector<1x32xf32>
    %228 = vector.extract_strided_slice %57 {offsets = [5, 0], sizes = [1, 32], strides = [1, 1]} : vector<8x32xf32> to vector<1x32xf32>
    %229 = vector.extract_strided_slice %57 {offsets = [6, 0], sizes = [1, 32], strides = [1, 1]} : vector<8x32xf32> to vector<1x32xf32>
    %230 = vector.extract_strided_slice %57 {offsets = [7, 0], sizes = [1, 32], strides = [1, 1]} : vector<8x32xf32> to vector<1x32xf32>
    %231 = tpu.concatenate %223, %224, %225, %226, %227, %228, %229, %230 in 1 : vector<1x32xf32>, vector<1x32xf32>, vector<1x32xf32>, vector<1x32xf32>, vector<1x32xf32>, vector<1x32xf32>, vector<1x32xf32>, vector<1x32xf32> -> vector<1x256xf32>
    %232 = vector.extract_strided_slice %76 {offsets = [0, 0], sizes = [1, 32], strides = [1, 1]} : vector<8x32xf32> to vector<1x32xf32>
    %233 = vector.extract_strided_slice %76 {offsets = [1, 0], sizes = [1, 32], strides = [1, 1]} : vector<8x32xf32> to vector<1x32xf32>
    %234 = vector.extract_strided_slice %76 {offsets = [2, 0], sizes = [1, 32], strides = [1, 1]} : vector<8x32xf32> to vector<1x32xf32>
    %235 = vector.extract_strided_slice %76 {offsets = [3, 0], sizes = [1, 32], strides = [1, 1]} : vector<8x32xf32> to vector<1x32xf32>
    %236 = vector.extract_strided_slice %76 {offsets = [4, 0], sizes = [1, 32], strides = [1, 1]} : vector<8x32xf32> to vector<1x32xf32>
    %237 = vector.extract_strided_slice %76 {offsets = [5, 0], sizes = [1, 32], strides = [1, 1]} : vector<8x32xf32> to vector<1x32xf32>
    %238 = vector.extract_strided_slice %76 {offsets = [6, 0], sizes = [1, 32], strides = [1, 1]} : vector<8x32xf32> to vector<1x32xf32>
    %239 = vector.extract_strided_slice %76 {offsets = [7, 0], sizes = [1, 32], strides = [1, 1]} : vector<8x32xf32> to vector<1x32xf32>
    %240 = tpu.concatenate %232, %233, %234, %235, %236, %237, %238, %239 in 1 : vector<1x32xf32>, vector<1x32xf32>, vector<1x32xf32>, vector<1x32xf32>, vector<1x32xf32>, vector<1x32xf32>, vector<1x32xf32>, vector<1x32xf32> -> vector<1x256xf32>
    %241 = tpu.concatenate %231, %240 in 0 : vector<1x256xf32>, vector<1x256xf32> -> vector<2x256xf32>
    %c0_55 = arith.constant 0 : index
    %c0_56 = arith.constant 0 : index
    %242 = vector.load %arg5[%c0_55, %c0_56] : memref<2x256xf32, #tpu.memory_space<vmem>>, vector<2x256xf32>
    tpu.vector_store %arg5[%c0_55, %c0_56], %241 {strides = array<i32>} : memref<2x256xf32, #tpu.memory_space<vmem>>, vector<2x256xf32>,
    return
  }
  func.func @transform_0(%arg0: i32) -> (i32, i32) {
    %c0_i32 = arith.constant 0 : i32
    %c0_i32_0 = arith.constant 0 : i32
    %c0_i32_1 = arith.constant 0 : i32
    return %c0_i32, %c0_i32_0 : i32, i32
  }
  func.func @transform_1(%arg0: i32) -> (i32, i32, i32) {
    %c0_i32 = arith.constant 0 : i32
    %c0_i32_0 = arith.constant 0 : i32
    %c0_i32_1 = arith.constant 0 : i32
    %c0_i32_2 = arith.constant 0 : i32
    return %c0_i32, %c0_i32_0, %c0_i32_1 : i32, i32, i32
  }
  func.func @transform_2(%arg0: i32) -> (i32, i32) {
    %c0_i32 = arith.constant 0 : i32
    %c0_i32_0 = arith.constant 0 : i32
    %c0_i32_1 = arith.constant 0 : i32
    return %c0_i32, %c0_i32_0 : i32, i32
  }
  func.func @transform_3(%arg0: i32) -> (i32, i32) {
    %c0_i32 = arith.constant 0 : i32
    %c0_i32_0 = arith.constant 0 : i32
    %c0_i32_1 = arith.constant 0 : i32
    return %c0_i32, %c0_i32_0 : i32, i32
  }
  func.func @transform_4(%arg0: i32) -> (i32, i32) {
    %c0_i32 = arith.constant 0 : i32
    %c0_i32_0 = arith.constant 0 : i32
    %c0_i32_1 = arith.constant 0 : i32
    return %c0_i32, %c0_i32_0 : i32, i32
  }
}

</mosaic_0001>

<bundles_post_ra>
// kernel: tpu_custom_call.1
= control target key start
LH: loop header
LB: loop body
LE: loop exit
PB: predicated region body
PF: predicated region fallthrough
CT: control target
= control target key end

     0   :  { %10 = vsyncpa [#allocation3], 0  ;;  %vm26_vm0 = vcmask 261120   ;;  %s3292_s0 = inlined_call_operand.vmem [shape: f32[16,32], index: 0, kind: input, shape index: {}]   ;;  %s3293_s1 = inlined_call_operand.vmem [shape: f32[4,33,128], index: 1, kind: input, shape index: {}]   ;;  %s3294_s2 = inlined_call_operand.vmem [shape: f32[46,32], index: 2, kind: input, shape index: {}]   ;;  %s3295_s3 = inlined_call_operand.hbm [shape: f32[2,256], index: 3, kind: output, shape index: {0}]   ;;  %s3296_s4 = inlined_call_operand.hbm [shape: f32[2,256], index: 4, kind: output, shape index: {1}]  }
   0x1   :  { %v2748_v0 = vld [vmem:[%s3292_s0] sm:$0xff]  ;;  %v2753_v1 = vld [vmem:[%s3292_s0 + $0x8] sm:$0xff] }
   0x2   :  { %11 = vsyncpa [#allocation5], 0  ;;  %v27_v2 = vsel %vm26_vm0, %v2748_v0, 0.0  ;;  %v30_v3 = vsel %vm26_vm0, %v2753_v1, 0.0  ;;  %v2766_v14 = vld [vmem:[%s3293_s1] sm:$0xff]  ;;  %v2771_v15 = vld [vmem:[%s3293_s1 + $0x8] sm:$0xff]  ;;  %v54_v37 = vlaneseq }
   0x3   :  { %28 = vadd.xlane.f32.xlu0 %v27_v2  ;;  %v2776_v16 = vld [vmem:[%s3293_s1 + $0x10] sm:$0xff]  ;;  %v2576_v17 = vpack.i.bf16 %v2771_v15, %v2766_v14  ;;  %v2400_v18 = vpack.c.bf16 %v2771_v15, %v2766_v14  ;;  %v2785_v19 = vld [vmem:[%s3293_s1 + $0x18] sm:$0xff]  ;;  %vm161_vm1 = vcmask 1041408   ;;  %v24_v23 = vld [vmem:[%s3294_s2 + $0x20] sm:$0xff]  ;;  %s2712_s10 = smov 32   ;;  %v2713_v60 = vmov 0.0|0.0  }
   0x4   :  { %v2404_v20 = vpack.c.bf16 %v2785_v19, %v2776_v16  ;;  %v22_v21 = vld [vmem:[%s3294_s2 + $0x10] sm:$0xff]  ;;  %v23_v22 = vld [vmem:[%s3294_s2 + $0x18] sm:$0xff]  ;;  %v167_v26 = vrot.slane %v24_v23, 6  ;;  %v2801_v27 = vld [vmem:[%s3294_s2 + $0x8] sm:$0xff]  ;;  %v2829_v41 = vshrl.u32 %v54_v37, 7  ;;  %2408 = vmatprep.subr.bf16.mxu1 %v2713_v60  ;;  %s2714_s14 = smov 96  }
   0x5   :  { %2401 = vmatprep.subr.bf16.mxu0 %v2400_v18  ;;  %v163_v24 = vrot.slane %v22_v21, 6  ;;  %v165_v25 = vrot.slane %v23_v22, 6  ;;  %v162_v28 = vrot.slane %v2801_v27, 6  ;;  %v25_v29 = vld [vmem:[%s3294_s2 + $0x28] sm:$0x3f]  ;;  %v2835_v44 = vld [vmem:[%s3294_s2] sm:$0xff]  ;;  %vm2909_vm3 = vmpackc.low %vm26_vm0, %vm26_vm0 }
   0x6   :  { %2403 = vmatpush3.bf16.msra.mxu0 %v2400_v18  ;;  %v169_v33 = vrot.slane %v25_v29, 6  ;;  %v56_v43 = vsub.s32 0, %v2829_v41  ;;  %v62_v45 = vsub.s32 1, %v2829_v41  ;;  %v2853_v59 = vld [vmem:[%s3293_s1 + $0x20] ss:$0 sm:$0xff]  ;;  %vm2715_vm2 = vmmov 0  }
   0x7   :  { %31 = vadd.xlane.f32.xlu0 %v30_v3  ;;  %2405 = vmatprep.subr.bf16.mxu0 %v2404_v20  ;;  %v2808_v30 = vsel %vm161_vm1, %v163_v24, %v165_v25  ;;  %v2815_v31 = vsel %vm161_vm1, %v162_v28, %v163_v24  ;;  %v2818_v32 = vsel %vm161_vm1, %v165_v25, %v167_v26  ;;  %v2716_v23 = vmov 0.0   ;;  %s2717_s15 = smov 64  }
   0x8   :  { %v2825_v34 = vsel %vm161_vm1, %v167_v26, %v169_v33  ;;  %v57_v46 = vrot.slane %v2835_v44, %v56_v43  ;;  %v63_v49 = vrot.slane %v2835_v44, %v62_v45  ;;  %v2848_v58 = vpack.c.bf16 %v2808_v30, %v2815_v31  ;;  %2221 = vmatprep.mubr.msk.f32.mxu1 %vm2715_vm2, %v2716_v23 }
   0x9   :  { %v2859_v61 = vpack.c.bf16 %v2825_v34, %v2818_v32  ;;  %v298_v45 = vrot.slane %v2835_v44, 6  ;;  %vm1874_vm4 = vcmask 523264   ;;  %vm1876_vm5 = vcmask 785408  }
   0xa   :  { %2407 = vmatpush3.bf16.msra.mxu0 %v2404_v20  ;;  %vm1920_vm6 = vcmask 1040384  }
   0xb   :  { %2416 = vmatprep.subr.bf16.mxu0 %v2713_v60 }
  0x1d   :  { %171 = vrot.lane.b32.xlu0 %v2815_v31, %s2712_s10 }
  0x90   :  { %v29_v4 = vpop.xlane.xlu0 %28 }
  0x91   :  { %v34_v5 = vmul.f32 0.03125, %v29_v4 }
  0x93   :  { %v36_v6 = vsub.f32 %v2748_v0, %v34_v5 }
  0x94   :  { %v32_v7 = vpop.xlane.xlu0 %31 }
  0x95   :  { %v35_v8 = vmul.f32 0.03125, %v32_v7  ;;  %v38_v9 = vmul.f32 %v36_v6, %v36_v6 }
  0x97   :  { %v37_v10 = vsub.f32 %v2753_v1, %v35_v8  ;;  %v40_v11 = vsel %vm26_vm0, %v38_v9, 0.0 }
  0x98   :  { %41 = vadd.xlane.f32.xlu1 %v40_v11  ;;  %v2868_v4 = vpop.permute.xlu0 %171 }
  0x99   :  { %v39_v12 = vmul.f32 %v37_v10, %v37_v10 }
  0x9b   :  { %v43_v13 = vsel %vm26_vm0, %v39_v12, 0.0 }
  0x9c   :  { %44 = vadd.xlane.f32.xlu1 %v43_v13 }
  0xad   :  { %173 = vrot.lane.b32.xlu1 %v2808_v30, %s2712_s10 }
  0xb1   :  { %175 = vrot.lane.b32.xlu1 %v2818_v32, %s2712_s10 }
  0xb5   :  { %177 = vrot.lane.b32.xlu1 %v2825_v34, %s2712_s10 }
 0x125   :  { %v42_v35 = vpop.xlane.xlu1 %41 }
 0x126   :  { %v46_v36 = vmul.f32 0.03125, %v42_v35 }
 0x128   :  { %v48_v38 = vadd.f32 1e-05, %v46_v36 }
 0x129   :  { %v45_v39 = vpop.xlane.xlu1 %44 }
 0x12a   :  { %2636 = vrsqrt.f32 %v48_v38  ;;  %v47_v40 = vmul.f32 0.03125, %v45_v39 }
 0x12c   :  { %v49_v42 = vadd.f32 1e-05, %v47_v40 }
 0x12d   :  { %v2842_v56 = vpop.permute.xlu1 %173 }
 0x12e   :  { %2638 = vrsqrt.f32 %v49_v42 }
 0x131   :  { %v2844_v57 = vpop.permute.xlu1 %175 }
 0x134   :  { %v2637_v47 = vpop.eup %2636 }
 0x135   :  { %v52_v48 = vmul.f32 %v2637_v47, %v36_v6  ;;  %v2862_v63 = vpop.permute.xlu1 %177  ;;  %v299_v47 = vsel %vm161_vm1, %v298_v45, %v162_v28 }
 0x137   :  { %v58_v50 = vmul.f32 %v57_v46, %v52_v48 }
 0x138   :  { %v2639_v51 = vpop.eup %2638 }
 0x139   :  { %v53_v52 = vmul.f32 %v2639_v51, %v37_v10  ;;  %v64_v53 = vadd.f32 %v63_v49, %v58_v50 }
 0x13b   :  { %v59_v54 = vmul.f32 %v57_v46, %v53_v52  ;;  %2210 = vmatprep.mubr.msk.f32.mxu0 %vm26_vm0, %v64_v53 }
 0x13d   :  { %v65_v55 = vadd.f32 %v63_v49, %v59_v54 }
 0x13f   :  { %2211 = vmatmul.mubr.msk.f32.vlgmr.msra.gmra.mrb[0].mxu0 %vm26_vm0, %v65_v55 }
 0x140   :  { %2418 = vmatpush3.bf16.msra.mxu0 %v2848_v58  ;;  %2232 = vmatprep.mubr.msk.f32.mxu0 %vm2715_vm2, %v2716_v23 }
 0x141   :  { %2419 = vmatprep.subr.bf16.mxu0 %v2713_v60 }
 0x144   :  { %2421 = vmatpush3.bf16.msra.mxu0 %v2859_v61 }
 0x145   :  { %2422 = vmatprep.subr.bf16.mxu0 %v2713_v60 }
 0x212   :  { %v2212_v62 = vpop.f32.mrb[0].mxu0 }
 0x213   :  { %v2866_v2 = vadd.f32 %v2212_v62, %v2853_v59  ;;  %v147_v3 = vpop.f32.mrb[1].mxu0 }
 0x214   :  { %v2871_v5 = vadd.f32 %v2853_v59, %v147_v3 }
 0x215   :  { %v479_v10 = vmul.f32 %v2862_v63, %v2866_v2  ;;  %v476_v11 = vmul.f32 %v2868_v4, %v2866_v2  ;;  %v478_v18 = vmul.f32 %v2844_v57, %v2866_v2  ;;  %v477_v20 = vmul.f32 %v2842_v56, %v2866_v2 }
 0x216   :  { %v186_v6 = vmul.f32 %v2862_v63, %v2871_v5  ;;  %v183_v7 = vmul.f32 %v2868_v4, %v2871_v5  ;;  %v185_v8 = vmul.f32 %v2844_v57, %v2871_v5  ;;  %v184_v9 = vmul.f32 %v2842_v56, %v2871_v5 }
 0x217   :  { %v2551_v21 = vpack.i.bf16 %v479_v10, %v478_v18  ;;  %v2546_v22 = vpack.i.bf16 %v477_v20, %v476_v11 }
 0x218   :  { %v2541_v12 = vpack.i.bf16 %v186_v6, %v185_v8  ;;  %v2536_v13 = vpack.i.bf16 %v184_v9, %v183_v7 }
 0x21a   :  { %2542 = vrot.lane.b32.xlu1 %v2541_v12, %s2714_s14  ;;  %2537 = vrot.lane.b32.xlu0 %v2536_v13, %s2714_s14 }
 0x21e   :  { %2552 = vrot.lane.b32.xlu1 %v2551_v21, %s2714_s14  ;;  %2547 = vrot.lane.b32.xlu0 %v2546_v22, %s2714_s14 }
 0x222   :  { %187 = vrot.lane.b32.xlu1 %v2815_v31, %s2717_s15 }
 0x226   :  { %189 = vrot.lane.b32.xlu1 %v2808_v30, %s2717_s15 }
 0x22a   :  { %191 = vrot.lane.b32.xlu1 %v2818_v32, %s2717_s15 }
 0x22e   :  { %193 = vrot.lane.b32.xlu1 %v2825_v34, %s2717_s15 }
 0x28c   :  { %v2538_v24 = vpop.permute.xlu0 %2537  ;;  %v2543_v31 = vpop.permute.xlu1 %2542 }
 0x28d   :  { %v2540_v25 = vunpack.i.h.bf16 %v2538_v24  ;;  %v2539_v26 = vunpack.i.l.bf16 %v2538_v24  ;;  %v2545_v30 = vunpack.i.h.bf16 %v2543_v31  ;;  %v2544_v32 = vunpack.i.l.bf16 %v2543_v31 }
 0x28f   :  { %v2409_v33 = vpack.c.bf16 %v2540_v25, %v2539_v26  ;;  %v2413_v35 = vpack.c.bf16 %v2545_v30, %v2544_v32 }
 0x290   :  { %v2548_v34 = vpop.permute.xlu0 %2547  ;;  %v2553_v39 = vpop.permute.xlu1 %2552 }
 0x291   :  { %2411 = vmatpush3.bf16.xpose.msk.msra.mxu1 %vm2909_vm3, %v2409_v33  ;;  %v2550_v36 = vunpack.i.h.bf16 %v2548_v34  ;;  %v2549_v37 = vunpack.i.l.bf16 %v2548_v34  ;;  %v2555_v40 = vunpack.i.h.bf16 %v2553_v39  ;;  %v2554_v42 = vunpack.i.l.bf16 %v2553_v39 }
 0x292   :  { %2412 = vmatprep.subr.bf16.mxu1 %v2713_v60 }
 0x293   :  { %v2429_v38 = vpack.c.bf16 %v2550_v36, %v2549_v37  ;;  %v2433_v43 = vpack.c.bf16 %v2555_v40, %v2554_v42 }
 0x294   :  { %v2934_v51 = vpop.permute.xlu1 %187 }
 0x295   :  { %v199_v8 = vmul.f32 %v2934_v51, %v2871_v5  ;;  %v480_v22 = vmul.f32 %v2934_v51, %v2866_v2 }
 0x298   :  { %v2937_v53 = vpop.permute.xlu1 %189 }
 0x299   :  { %2415 = vmatpush3.bf16.xpose.msk.msra.mxu1 %vm2909_vm3, %v2413_v35  ;;  %v200_v28 = vmul.f32 %v2937_v53, %v2871_v5  ;;  %v481_v20 = vmul.f32 %v2937_v53, %v2866_v2 }
 0x29a   :  { %2428 = vmatprep.subr.bf16.mxu1 %v2713_v60 }
 0x29b   :  { %v2556_v10 = vpack.i.bf16 %v200_v28, %v199_v8 }
 0x29c   :  { %v2939_v55 = vpop.permute.xlu1 %191 }
 0x29d   :  { %v201_v11 = vmul.f32 %v2939_v55, %v2871_v5  ;;  %v482_v18 = vmul.f32 %v2939_v55, %v2866_v2 }
 0x2a0   :  { %2222 = vmatmul.mubr.msk.f32.vlgmr.msra.gmra.mrb[0].mxu1 %vm26_vm0, %v2871_v5  ;;  %v2944_v7 = vpop.permute.xlu1 %193 }
 0x2a1   :  { %2431 = vmatpush3.bf16.xpose.msk.msra.mxu1 %vm2909_vm3, %v2429_v38  ;;  %2254 = vmatprep.mubr.msk.f32.mxu1 %vm2715_vm2, %v2716_v23  ;;  %v202_v9 = vmul.f32 %v2944_v7, %v2871_v5  ;;  %v483_v12 = vmul.f32 %v2944_v7, %v2866_v2  ;;  %v2566_v5 = vpack.i.bf16 %v481_v20, %v480_v22 }
 0x2a2   :  { %2432 = vmatprep.subr.bf16.mxu1 %v2713_v60 }
 0x2a3   :  { %v2561_v13 = vpack.i.bf16 %v202_v9, %v201_v11  ;;  %v2571_v21 = vpack.i.bf16 %v483_v12, %v482_v18 }
 0x2a9   :  { %2435 = vmatpush3.bf16.xpose.msk.msra.mxu1 %vm2909_vm3, %v2433_v43 }
 0x2b0   :  { %2255 = vmatmul.mubr.msk.f32.vlgmr.msra.gmra.mrb[2].mxu1 %vm26_vm0, %v2866_v2 }
 0x373   :  { %v292_v46 = vpop.f32.mrb[0].mxu1 }
 0x374   :  { %v296_v48 = vmul.f32 0.35355338, %v292_v46  ;;  %v2223_v49 = vpop.f32.mrb[1].mxu1 }
 0x376   :  { %v301_v50 = vadd.f32 %v299_v47, %v296_v48 }
 0x378   :  { %v302_v52 = vsel %vm26_vm0, %v301_v50, -inf }
 0x379   :  { %303 = vmax.xlane.f32.xlu0 %v302_v52 }
 0x383   :  { %v573_v54 = vpop.f32.mrb[2].mxu1 }
 0x384   :  { %v577_v62 = vmul.f32 0.35355338, %v573_v54  ;;  %v2256_v3 = vpop.f32.mrb[3].mxu1 }
 0x386   :  { %v578_v6 = vadd.f32 %v577_v62, %v299_v47  ;;  %v2581_v62 = vpack.i.bf16 %v2785_v19, %v2776_v16 }
 0x388   :  { %v579_v27 = vsel %vm26_vm0, %v578_v6, -inf }
 0x389   :  { %580 = vmax.xlane.f32.xlu1 %v579_v27 }
 0x38f   :  { %2557 = vrot.lane.b32.xlu0 %v2556_v10, %s2717_s15 }
 0x393   :  { %2562 = vrot.lane.b32.xlu0 %v2561_v13, %s2717_s15 }
 0x397   :  { %2572 = vrot.lane.b32.xlu0 %v2571_v21, %s2717_s15 }
 0x39a   :  { %2567 = vrot.lane.b32.xlu1 %v2566_v5, %s2717_s15 }
 0x39b   :  { %2577 = vrot.lane.b32.xlu0 %v2576_v17, %s2712_s10 }
 0x39f   :  { %2582 = vrot.lane.b32.xlu0 %v2581_v62, %s2712_s10  ;;  %v880_v62 = vsub.s32 2, %v2829_v41 }
 0x3a3   :  { %766 = vrot.lane.b32.xlu0 %v2853_v59, %s2712_s10 }
 0x406   :  { %v304_v24 = vpop.xlane.xlu0 %303 }
 0x407   :  { %v305_v25 = vsub.f32 %v301_v50, %v304_v24 }
 0x409   :  { %v306_v26 = vmul.f32 1.442695, %v305_v25 }
 0x40a   :  { %v2558_v33 = vpop.permute.xlu0 %2557 }
 0x40b   :  { %2640 = vpow2.f32 %v306_v26  ;;  %v2560_v31 = vunpack.i.h.bf16 %v2558_v33  ;;  %v2559_v30 = vunpack.i.l.bf16 %v2558_v33 }
 0x40d   :  { %v2423_v2 = vpack.c.bf16 %v2560_v31, %v2559_v30 }
 0x40e   :  { %v2563_v32 = vpop.permute.xlu0 %2562 }
 0x40f   :  { %v2565_v34 = vunpack.i.h.bf16 %v2563_v32  ;;  %v2564_v36 = vunpack.i.l.bf16 %v2563_v32 }
 0x411   :  { %v2426_v14 = vpack.c.bf16 %v2565_v34, %v2564_v36 }
 0x412   :  { %v2573_v47 = vpop.permute.xlu0 %2572 }
 0x413   :  { %v2575_v49 = vunpack.i.h.bf16 %v2573_v47  ;;  %v2574_v50 = vunpack.i.l.bf16 %v2573_v47 }
 0x415   :  { %v2641_v35 = vpop.eup %2640  ;;  %v2446_v54 = vpack.c.bf16 %v2575_v49, %v2574_v50 }
 0x416   :  { %2233 = vmatmul.mubr.msk.f32.vlgmr.msra.gmra.mrb[2].mxu0 %vm26_vm0, %v2641_v35  ;;  %v581_v15 = vpop.xlane.xlu1 %580  ;;  %v2578_v3 = vpop.permute.xlu0 %2577 }
 0x417   :  { %2424 = vmatpush3.bf16.msra.mxu0 %v2423_v2  ;;  %2243 = vmatprep.mubr.msk.f32.mxu0 %vm2715_vm2, %v2716_v23  ;;  %v582_v38 = vsub.f32 %v578_v6, %v581_v15  ;;  %v2580_v6 = vunpack.i.h.bf16 %v2578_v3  ;;  %v2579_v27 = vunpack.i.l.bf16 %v2578_v3  ;;  %v886_v3 = vsub.s32 3, %v2829_v41 }
 0x418   :  { %2425 = vmatprep.subr.bf16.mxu0 %v2713_v60 }
 0x419   :  { %v583_v39 = vmul.f32 1.442695, %v582_v38  ;;  %v2448_v28 = vpack.c.bf16 %v2580_v6, %v2579_v27  ;;  %v3018_v38 = vld [vmem:[%s3293_s1 + $0x28] sm:$0xff]  ;;  %v881_v6 = vrot.slane %v2835_v44, %v880_v62 }
 0x41a   :  { %v2568_v43 = vpop.permute.xlu1 %2567  ;;  %v2583_v12 = vpop.permute.xlu0 %2582 }
 0x41b   :  { %2427 = vmatpush3.bf16.msra.mxu0 %v2426_v14  ;;  %v2570_v45 = vunpack.i.h.bf16 %v2568_v43  ;;  %v2569_v46 = vunpack.i.l.bf16 %v2568_v43  ;;  %2449 = vmatprep.subr.bf16.mxu1 %v2448_v28  ;;  %v2585_v16 = vunpack.i.h.bf16 %v2583_v12  ;;  %v2584_v19 = vunpack.i.l.bf16 %v2583_v12  ;;  %v3030_v43 = vld [vmem:[%s3293_s1 + $0x38] sm:$0xff] }
 0x41c   :  { %2436 = vmatprep.subr.bf16.mxu0 %v2713_v60  ;;  %2451 = vmatpush3.bf16.msra.mxu1 %v2448_v28 }
 0x41d   :  { %v2443_v52 = vpack.c.bf16 %v2570_v45, %v2569_v46  ;;  %v2452_v13 = vpack.c.bf16 %v2585_v16, %v2584_v19  ;;  %v3035_v45 = vld [vmem:[%s3293_s1 + $0x40] sm:$0xff] }
 0x41e   :  { %v767_v22 = vpop.permute.xlu0 %766  ;;  %v2460_v46 = vpack.c.bf16 %v3035_v45, %v3030_v43 }
 0x41f   :  { %2453 = vmatprep.subr.bf16.mxu1 %v2452_v13 }
 0x420   :  { %2455 = vmatpush3.bf16.msra.mxu1 %v2452_v13  ;;  %v3055_v13 = vld [vmem:[%s3293_s1 + $0x48] ss:$0 sm:$0xff] }
 0x421   :  { %2464 = vmatprep.subr.bf16.mxu1 %v2713_v60 }
 0x4e9   :  { %v381_v17 = vpop.f32.mrb[2].mxu0 }
 0x4ea   :  { %2642 = vrcp.f32 %v381_v17  ;;  %v2234_v37 = vpop.f32.mrb[3].mxu0 }
 0x4eb   :  { %2644 = vpow2.f32 %v583_v39  ;;  %v3023_v39 = vld [vmem:[%s3293_s1 + $0x30] sm:$0xff] }
 0x4f4   :  { %v2643_v40 = vpop.eup %2642 }
 0x4f5   :  { %v2973_v42 = vmul.f32 %v2643_v40, %v2641_v35  ;;  %v2645_v48 = vpop.eup %2644  ;;  %v2456_v40 = vpack.c.bf16 %v3023_v39, %v3018_v38 }
 0x4f7   :  { %2244 = vmatmul.mubr.msk.f32.vlgmr.msra.gmra.mrb[4].mxu0 %vm26_vm0, %v2973_v42 }
 0x4f8   :  { %2438 = vmatpush3.bf16.msra.mxu0 %v2848_v58  ;;  %2265 = vmatprep.mubr.msk.f32.mxu0 %vm2715_vm2, %v2716_v23 }
 0x4f9   :  { %2439 = vmatprep.subr.bf16.mxu0 %v2713_v60 }
 0x4fc   :  { %2441 = vmatpush3.bf16.msra.mxu0 %v2859_v61 }
 0x4fd   :  { %2442 = vmatprep.subr.bf16.mxu0 %v2713_v60 }
 0x4ff   :  { %2266 = vmatmul.mubr.msk.f32.vlgmr.msra.gmra.mrb[6].mxu0 %vm26_vm0, %v2645_v48 }
 0x500   :  { %2444 = vmatpush3.bf16.msra.mxu0 %v2443_v52  ;;  %2276 = vmatprep.mubr.msk.f32.mxu0 %vm2715_vm2, %v2716_v23 }
 0x501   :  { %2445 = vmatprep.subr.bf16.mxu0 %v2713_v60 }
 0x504   :  { %2447 = vmatpush3.bf16.msra.mxu0 %v2446_v54 }
 0x505   :  { %2457 = vmatprep.subr.bf16.mxu0 %v2456_v40 }
 0x5ca   :  { %v472_v8 = vpop.f32.mrb[4].mxu0 }
 0x5cb   :  { %v2245_v9 = vpop.f32.mrb[5].mxu0  ;;  %2287 = vmatprep.mubr.msk.f32.mxu1 %vm26_vm0, %v472_v8  ;;  %v887_v8 = vrot.slane %v2835_v44, %v886_v3 }
 0x5d2   :  { %v654_v10 = vpop.f32.mrb[6].mxu0 }
 0x5d3   :  { %2646 = vrcp.f32 %v654_v10  ;;  %v2267_v11 = vpop.f32.mrb[7].mxu0 }
 0x5dd   :  { %v2647_v18 = vpop.eup %2646 }
 0x5de   :  { %v2994_v20 = vmul.f32 %v2647_v18, %v2645_v48 }
 0x5e0   :  { %2277 = vmatmul.mubr.msk.f32.vlgmr.msra.gmra.mrb[8].mxu0 %vm26_vm0, %v2994_v20 }
 0x5e1   :  { %2459 = vmatpush3.bf16.msra.mxu0 %v2456_v40 }
 0x5e2   :  { %2461 = vmatprep.subr.bf16.mxu0 %v2460_v46 }
 0x5e5   :  { %2463 = vmatpush3.bf16.msra.mxu0 %v2460_v46 }
 0x5e6   :  { %2472 = vmatprep.subr.bf16.mxu0 %v2713_v60 }
 0x6b3   :  { %v745_v59 = vpop.f32.mrb[8].mxu0 }
 0x6b4   :  { %v2278_v21 = vpop.f32.mrb[9].mxu0  ;;  %2288 = vmatmul.mubr.msk.f32.vlgmr.msra.gmra.mrb[4].mxu1 %vm26_vm0, %v745_v59 }
 0x6b5   :  { %2309 = vmatprep.mubr.msk.f32.mxu1 %vm2715_vm2, %v2716_v23 }
 0x787   :  { %v2289_v5 = vpop.f32.mrb[4].mxu1 }
 0x788   :  { %v847_v24 = vadd.f32 %v2289_v5, %v767_v22  ;;  %v841_v25 = vpop.f32.mrb[5].mxu1 }
 0x789   :  { %v842_v26 = vadd.f32 %v841_v25, %v767_v22 }
 0x78a   :  { %v3002_v33 = vadd.f32 %v847_v24, %v2753_v1 }
 0x78b   :  { %v3005_v31 = vadd.f32 %v842_v26, %v2748_v0 }
 0x78c   :  { %v855_v30 = vsel %vm26_vm0, %v3002_v33, 0.0 }
 0x78d   :  { %856 = vadd.xlane.f32.xlu0 %v855_v30  ;;  %v852_v32 = vsel %vm26_vm0, %v3005_v31, 0.0 }
 0x78e   :  { %853 = vadd.xlane.f32.xlu1 %v852_v32 }
 0x81a   :  { %v857_v35 = vpop.xlane.xlu0 %856 }
 0x81b   :  { %v859_v2 = vmul.f32 0.03125, %v857_v35  ;;  %v854_v34 = vpop.xlane.xlu1 %853 }
 0x81c   :  { %v858_v36 = vmul.f32 0.03125, %v854_v34 }
 0x81d   :  { %v861_v14 = vsub.f32 %v3002_v33, %v859_v2 }
 0x81e   :  { %v860_v1 = vsub.f32 %v3005_v31, %v858_v36 }
 0x81f   :  { %v863_v17 = vmul.f32 %v861_v14, %v861_v14 }
 0x820   :  { %v862_v15 = vmul.f32 %v860_v1, %v860_v1 }
 0x821   :  { %v867_v37 = vsel %vm26_vm0, %v863_v17, 0.0 }
 0x822   :  { %v864_v0 = vsel %vm26_vm0, %v862_v15, 0.0 }
 0x823   :  { %865 = vadd.xlane.f32.xlu0 %v864_v0 }
 0x827   :  { %868 = vadd.xlane.f32.xlu0 %v867_v37 }
 0x8b0   :  { %v866_v47 = vpop.xlane.xlu0 %865 }
 0x8b1   :  { %v870_v48 = vmul.f32 0.03125, %v866_v47 }
 0x8b3   :  { %v872_v49 = vadd.f32 1e-05, %v870_v48 }
 0x8b4   :  { %v869_v50 = vpop.xlane.xlu0 %868 }
 0x8b5   :  { %2648 = vrsqrt.f32 %v872_v49  ;;  %v871_v52 = vmul.f32 0.03125, %v869_v50 }
 0x8b7   :  { %v873_v54 = vadd.f32 1e-05, %v871_v52 }
 0x8b9   :  { %2650 = vrsqrt.f32 %v873_v54 }
 0x8bf   :  { %v2649_v27 = vpop.eup %2648 }
 0x8c0   :  { %v876_v28 = vmul.f32 %v2649_v27, %v860_v1 }
 0x8c2   :  { %v882_v9 = vmul.f32 %v881_v6, %v876_v28 }
 0x8c3   :  { %v2651_v10 = vpop.eup %2650 }
 0x8c4   :  { %v877_v11 = vmul.f32 %v2651_v10, %v861_v14  ;;  %v888_v12 = vadd.f32 %v887_v8, %v882_v9 }
 0x8c6   :  { %v883_v16 = vmul.f32 %v881_v6, %v877_v11  ;;  %2298 = vmatprep.mubr.msk.f32.mxu0 %vm26_vm0, %v888_v12 }
 0x8c8   :  { %v889_v19 = vadd.f32 %v887_v8, %v883_v16 }
 0x8ca   :  { %2299 = vmatmul.mubr.msk.f32.vlgmr.msra.gmra.mrb[10].mxu0 %vm26_vm0, %v889_v19 }
 0x8cb   :  { %2474 = vmatpush3.bf16.msra.mxu0 %v2848_v58  ;;  %2320 = vmatprep.mubr.msk.f32.mxu0 %vm2715_vm2, %v2716_v23 }
 0x8cc   :  { %2475 = vmatprep.subr.bf16.mxu0 %v2713_v60 }
 0x8cf   :  { %2477 = vmatpush3.bf16.msra.mxu0 %v2859_v61 }
 0x8d0   :  { %2478 = vmatprep.subr.bf16.mxu0 %v2713_v60 }
 0x99d   :  { %v2300_v18 = vpop.f32.mrb[10].mxu0 }
 0x99e   :  { %v972_v59 = vpop.f32.mrb[11].mxu0  ;;  %v3058_v21 = vadd.f32 %v2300_v18, %v3055_v13 }
 0x99f   :  { %v973_v22 = vadd.f32 %v3055_v13, %v972_v59 }
 0x9a0   :  { %v1253_v35 = vmul.f32 %v3058_v21, %v2868_v4  ;;  %v1254_v2 = vmul.f32 %v3058_v21, %v2842_v56  ;;  %v1255_v36 = vmul.f32 %v3058_v21, %v2844_v57  ;;  %v1256_v14 = vmul.f32 %v3058_v21, %v2862_v63 }
 0x9a1   :  { %v983_v5 = vmul.f32 %v973_v22, %v2844_v57  ;;  %v984_v24 = vmul.f32 %v973_v22, %v2862_v63  ;;  %v981_v25 = vmul.f32 %v973_v22, %v2868_v4  ;;  %v982_v26 = vmul.f32 %v973_v22, %v2842_v56 }
 0x9a2   :  { %v2596_v34 = vpack.i.bf16 %v1254_v2, %v1253_v35  ;;  %v2601_v1 = vpack.i.bf16 %v1256_v14, %v1255_v36  ;;  %v987_v28 = vmul.f32 %v973_v22, %v2939_v55  ;;  %v988_v8 = vmul.f32 %v973_v22, %v2944_v7 }
 0x9a3   :  { %v2591_v30 = vpack.i.bf16 %v984_v24, %v983_v5  ;;  %v2586_v32 = vpack.i.bf16 %v982_v26, %v981_v25  ;;  %v1257_v16 = vmul.f32 %v3058_v21, %v2934_v51  ;;  %v1258_v19 = vmul.f32 %v3058_v21, %v2937_v53 }
 0x9a4   :  { %v2611_v29 = vpack.i.bf16 %v988_v8, %v987_v28  ;;  %v985_v59 = vmul.f32 %v973_v22, %v2934_v51  ;;  %v986_v5 = vmul.f32 %v973_v22, %v2937_v53  ;;  %v1259_v25 = vmul.f32 %v3058_v21, %v2939_v55 }
 0x9a5   :  { %2592 = vrot.lane.b32.xlu0 %v2591_v30, %s2714_s14  ;;  %2587 = vrot.lane.b32.xlu1 %v2586_v32, %s2714_s14  ;;  %v2616_v18 = vpack.i.bf16 %v1258_v19, %v1257_v16  ;;  %v1260_v26 = vmul.f32 %v3058_v21, %v2944_v7 }
 0x9a6   :  { %v2606_v24 = vpack.i.bf16 %v986_v5, %v985_v59 }
 0x9a7   :  { %v2621_v30 = vpack.i.bf16 %v1260_v26, %v1259_v25  ;;  %v1981_v25 = vrot.slane %v2994_v20, 5  ;;  %v1985_v26 = vrot.slane %v2994_v20, 6 }
 0x9a9   :  { %2597 = vrot.lane.b32.xlu1 %v2596_v34, %s2714_s14 }
 0x9ad   :  { %2602 = vrot.lane.b32.xlu1 %v2601_v1, %s2714_s14 }
 0xa17   :  { %v2588_v4 = vpop.permute.xlu1 %2587  ;;  %v2593_v17 = vpop.permute.xlu0 %2592 }
 0xa18   :  { %v2590_v15 = vunpack.i.h.bf16 %v2588_v4  ;;  %v2589_v0 = vunpack.i.l.bf16 %v2588_v4  ;;  %v2595_v37 = vunpack.i.h.bf16 %v2593_v17  ;;  %v2594_v57 = vunpack.i.l.bf16 %v2593_v17 }
 0xa1a   :  { %v2465_v56 = vpack.c.bf16 %v2590_v15, %v2589_v0  ;;  %v2469_v40 = vpack.c.bf16 %v2595_v37, %v2594_v57 }
 0xa1b   :  { %v2598_v46 = vpop.permute.xlu1 %2597 }
 0xa1c   :  { %2467 = vmatpush3.bf16.xpose.msk.msra.mxu1 %vm2909_vm3, %v2465_v56  ;;  %v2600_v63 = vunpack.i.h.bf16 %v2598_v46  ;;  %v2599_v47 = vunpack.i.l.bf16 %v2598_v46 }
 0xa1d   :  { %2468 = vmatprep.subr.bf16.mxu1 %v2713_v60 }
 0xa1e   :  { %v2485_v48 = vpack.c.bf16 %v2600_v63, %v2599_v47 }
 0xa1f   :  { %v2603_v49 = vpop.permute.xlu1 %2602 }
 0xa20   :  { %v2605_v50 = vunpack.i.h.bf16 %v2603_v49  ;;  %v2604_v52 = vunpack.i.l.bf16 %v2603_v49 }
 0xa22   :  { %v2489_v54 = vpack.c.bf16 %v2605_v50, %v2604_v52  ;;  %v2626_v52 = vpack.i.bf16 %v3023_v39, %v3018_v38 }
 0xa24   :  { %2471 = vmatpush3.bf16.xpose.msk.msra.mxu1 %vm2909_vm3, %v2469_v40 }
 0xa25   :  { %2484 = vmatprep.subr.bf16.mxu1 %v2713_v60 }
 0xa2b   :  { %2310 = vmatmul.mubr.msk.f32.vlgmr.msra.gmra.mrb[6].mxu1 %vm26_vm0, %v973_v22 }
 0xa2c   :  { %2487 = vmatpush3.bf16.xpose.msk.msra.mxu1 %vm2909_vm3, %v2485_v48  ;;  %2342 = vmatprep.mubr.msk.f32.mxu1 %vm2715_vm2, %v2716_v23 }
 0xa2d   :  { %2488 = vmatprep.subr.bf16.mxu1 %v2713_v60 }
 0xa34   :  { %2491 = vmatpush3.bf16.xpose.msk.msra.mxu1 %vm2909_vm3, %v2489_v54 }
 0xa3b   :  { %2343 = vmatmul.mubr.msk.f32.vlgmr.msra.gmra.mrb[8].mxu1 %vm26_vm0, %v3058_v21 }
 0xafe   :  { %v1078_v62 = vpop.f32.mrb[6].mxu1 }
 0xaff   :  { %v1082_v3 = vmul.f32 0.35355338, %v1078_v62  ;;  %v2311_v6 = vpop.f32.mrb[7].mxu1 }
 0xb01   :  { %v1083_v27 = vsel %vm26_vm0, %v1082_v3, -inf }
 0xb02   :  { %1084 = vmax.xlane.f32.xlu1 %v1083_v27 }
 0xb0e   :  { %v1350_v9 = vpop.f32.mrb[8].mxu1 }
 0xb0f   :  { %v1354_v10 = vmul.f32 0.35355338, %v1350_v9  ;;  %v2344_v11 = vpop.f32.mrb[9].mxu1 }
 0xb11   :  { %v1355_v12 = vsel %vm26_vm0, %v1354_v10, -inf }
 0xb12   :  { %1356 = vmax.xlane.f32.xlu0 %v1355_v12 }
 0xb13   :  { %2612 = vrot.lane.b32.xlu1 %v2611_v29, %s2717_s15 }
 0xb17   :  { %2617 = vrot.lane.b32.xlu1 %v2616_v18, %s2717_s15 }
 0xb1b   :  { %2627 = vrot.lane.b32.xlu1 %v2626_v52, %s2712_s10 }
 0xb1f   :  { %1542 = vrot.lane.b32.xlu1 %v3055_v13, %s2712_s10 }
 0xb28   :  { %2607 = vrot.lane.b32.xlu0 %v2606_v24, %s2717_s15 }
 0xb2c   :  { %2622 = vrot.lane.b32.xlu0 %v2621_v30, %s2717_s15  ;;  %v1953_v30 = vrot.slane %v2973_v42, 6 }
 0xb8f   :  { %v1085_v32 = vpop.xlane.xlu1 %1084 }
 0xb90   :  { %v1086_v35 = vsub.f32 %v1082_v3, %v1085_v32 }
 0xb92   :  { %v1087_v2 = vmul.f32 1.442695, %v1086_v35 }
 0xb93   :  { %v2613_v53 = vpop.permute.xlu1 %2612 }
 0xb94   :  { %2652 = vpow2.f32 %v1087_v2  ;;  %v2615_v21 = vunpack.i.h.bf16 %v2613_v53  ;;  %v2614_v36 = vunpack.i.l.bf16 %v2613_v53 }
 0xb96   :  { %v2482_v1 = vpack.c.bf16 %v2615_v21, %v2614_v36  ;;  %v1967_v36 = vrot.slane %v2994_v20, 1 }
 0xb97   :  { %v2618_v57 = vpop.permute.xlu1 %2617 }
 0xb98   :  { %v2620_v40 = vunpack.i.h.bf16 %v2618_v57  ;;  %v2619_v46 = vunpack.i.l.bf16 %v2618_v57 }
 0xb9a   :  { %v2499_v48 = vpack.c.bf16 %v2620_v40, %v2619_v46  ;;  %v2095_v40 = vld [vmem:[%s3293_s1 + $0x78] sm:$0xff]  ;;  %v2096_v46 = vld [vmem:[%s3293_s1 + $0x80] sm:$0xff] }
 0xb9b   :  { %v2628_v3 = vpop.permute.xlu1 %2627 }
 0xb9c   :  { %v2630_v38 = vunpack.i.h.bf16 %v2628_v3  ;;  %v2629_v39 = vunpack.i.l.bf16 %v2628_v3  ;;  %v1662_v3 = vsub.s32 5, %v2829_v41 }
 0xb9e   :  { %v2653_v34 = vpop.eup %2652 }
 0xb9f   :  { %2321 = vmatmul.mubr.msk.f32.vlgmr.msra.gmra.mrb[12].mxu0 %vm26_vm0, %v2653_v34  ;;  %v1357_v51 = vpop.xlane.xlu0 %1356  ;;  %v1543_v11 = vpop.permute.xlu1 %1542 }
 0xba0   :  { %2331 = vmatprep.mubr.msk.f32.mxu0 %vm2715_vm2, %v2716_v23  ;;  %v1358_v0 = vsub.f32 %v1354_v10, %v1357_v51 }
 0xba2   :  { %v1359_v56 = vmul.f32 1.442695, %v1358_v0 }
 0xba3   :  { %v2608_v55 = vpop.permute.xlu0 %2607 }
 0xba4   :  { %v2610_v22 = vunpack.i.h.bf16 %v2608_v55  ;;  %v2609_v7 = vunpack.i.l.bf16 %v2608_v55 }
 0xba6   :  { %v2479_v14 = vpack.c.bf16 %v2610_v22, %v2609_v7 }
 0xba7   :  { %v2623_v63 = vpop.permute.xlu0 %2622 }
 0xba8   :  { %2480 = vmatpush3.bf16.msra.mxu0 %v2479_v14  ;;  %v2625_v49 = vunpack.i.h.bf16 %v2623_v63  ;;  %v2624_v50 = vunpack.i.l.bf16 %v2623_v63  ;;  %v1971_v14 = vrot.slane %v2994_v20, 2  ;;  %v2097_v63 = vld [vmem:[%s3293_s1 + $0x88] sm:$0xff] }
 0xba9   :  { %2481 = vmatprep.subr.bf16.mxu0 %v2713_v60 }
 0xbac   :  { %2483 = vmatpush3.bf16.msra.mxu0 %v2482_v1  ;;  %v1949_v1 = vrot.slane %v2973_v42, 5 }
 0xbad   :  { %2492 = vmatprep.subr.bf16.mxu0 %v2713_v60 }
 0xc72   :  { %v1158_v4 = vpop.f32.mrb[12].mxu0 }
 0xc73   :  { %2654 = vrcp.f32 %v1158_v4  ;;  %v2322_v15 = vpop.f32.mrb[13].mxu0  ;;  %v2090_v4 = vld [vmem:[%s3293_s1 + $0x50] sm:$0xff] }
 0xc74   :  { %2656 = vpow2.f32 %v1359_v56  ;;  %v2091_v15 = vld [vmem:[%s3293_s1 + $0x58] sm:$0xff]  ;;  %v2092_v56 = vld [vmem:[%s3293_s1 + $0x60] sm:$0xff] }
 0xc75   :  { %v2512_v0 = vpack.c.bf16 %v2091_v15, %v2090_v4 }
 0xc7d   :  { %v2655_v17 = vpop.eup %2654 }
 0xc7e   :  { %v1163_v37 = vmul.f32 %v2655_v17, %v2653_v34  ;;  %v2657_v47 = vpop.eup %2656  ;;  %v2093_v17 = vld [vmem:[%s3293_s1 + $0x68] sm:$0xff] }
 0xc7f   :  { %v2516_v57 = vpack.c.bf16 %v2093_v17, %v2092_v56 }
 0xc80   :  { %2332 = vmatmul.mubr.msk.f32.vlgmr.msra.gmra.mrb[14].mxu0 %vm26_vm0, %v1163_v37  ;;  %v1989_v37 = vrot.slane %v2994_v20, 7 }
 0xc81   :  { %2494 = vmatpush3.bf16.msra.mxu0 %v2848_v58  ;;  %2353 = vmatprep.mubr.msk.f32.mxu0 %vm2715_vm2, %v2716_v23  ;;  %v2502_v58 = vpack.c.bf16 %v2625_v49, %v2624_v50  ;;  %v2098_v49 = vld [vmem:[%s3293_s1 + $0x90] sm:$0xff] }
 0xc82   :  { %2495 = vmatprep.subr.bf16.mxu0 %v2713_v60  ;;  %v2524_v50 = vpack.c.bf16 %v2098_v49, %v2097_v63 }
 0xc85   :  { %2497 = vmatpush3.bf16.msra.mxu0 %v2859_v61  ;;  %v2631_v61 = vpack.i.bf16 %v3035_v45, %v3030_v43  ;;  %v2504_v45 = vpack.c.bf16 %v2630_v38, %v2629_v39 }
 0xc86   :  { %2498 = vmatprep.subr.bf16.mxu0 %v2713_v60 }
 0xc87   :  { %2632 = vrot.lane.b32.xlu0 %v2631_v61, %s2712_s10  ;;  %2505 = vmatprep.subr.bf16.mxu1 %v2504_v45 }
 0xc88   :  { %2354 = vmatmul.mubr.msk.f32.vlgmr.msra.gmra.mrb[16].mxu0 %vm26_vm0, %v2657_v47  ;;  %2507 = vmatpush3.bf16.msra.mxu1 %v2504_v45 }
 0xc89   :  { %2500 = vmatpush3.bf16.msra.mxu0 %v2499_v48  ;;  %2364 = vmatprep.mubr.msk.f32.mxu0 %vm2715_vm2, %v2716_v23  ;;  %v2520_v48 = vpack.c.bf16 %v2096_v46, %v2095_v40 }
 0xc8a   :  { %2501 = vmatprep.subr.bf16.mxu0 %v2713_v60 }
 0xc8d   :  { %2503 = vmatpush3.bf16.msra.mxu0 %v2502_v58 }
 0xc8e   :  { %2513 = vmatprep.subr.bf16.mxu0 %v2512_v0 }
 0xcf9   :  { %v2633_v6 = vpop.permute.xlu0 %2632 }
 0xcfa   :  { %v2635_v27 = vunpack.i.h.bf16 %v2633_v6  ;;  %v2634_v43 = vunpack.i.l.bf16 %v2633_v6 }
 0xcfc   :  { %v2508_v28 = vpack.c.bf16 %v2635_v27, %v2634_v43  ;;  %v1663_v27 = vrot.slane %v2835_v44, %v1662_v3 }
 0xcfe   :  { %2509 = vmatprep.subr.bf16.mxu1 %v2508_v28 }
 0xcff   :  { %2511 = vmatpush3.bf16.msra.mxu1 %v2508_v28 }
 0xd00   :  { %2521 = vmatprep.subr.bf16.mxu1 %v2520_v48 }
 0xd53   :  { %v1249_v54 = vpop.f32.mrb[14].mxu0 }
 0xd54   :  { %v2333_v62 = vpop.f32.mrb[15].mxu0  ;;  %2375 = vmatprep.mubr.msk.f32.mxu1 %vm26_vm0, %v1249_v54 }
 0xd5b   :  { %v1430_v60 = vpop.f32.mrb[16].mxu0 }
 0xd5c   :  { %2658 = vrcp.f32 %v1430_v60  ;;  %v2355_v23 = vpop.f32.mrb[17].mxu0 }
 0xd5d   :  { %v1656_v23 = vsub.s32 4, %v2829_v41  ;;  %v2100_v41 = vld [vmem:[%s3293_s1 + $0x70] ss:$0 sm:$0xff] }
 0xd5f   :  { %v1657_v6 = vrot.slane %v2835_v44, %v1656_v23 }
 0xd66   :  { %v2659_v8 = vpop.eup %2658 }
 0xd67   :  { %v1435_v13 = vmul.f32 %v2659_v8, %v2657_v47  ;;  %v1939_v47 = vrot.slane %v2973_v42, 2 }
 0xd69   :  { %2365 = vmatmul.mubr.msk.f32.vlgmr.msra.gmra.mrb[18].mxu0 %vm26_vm0, %v1435_v13 }
 0xd6a   :  { %2515 = vmatpush3.bf16.msra.mxu0 %v2512_v0 }
 0xd6b   :  { %2517 = vmatprep.subr.bf16.mxu0 %v2516_v57 }
 0xd6e   :  { %2519 = vmatpush3.bf16.msra.mxu0 %v2516_v57 }
 0xe3c   :  { %v1521_v9 = vpop.f32.mrb[18].mxu0 }
 0xe3d   :  { %v2366_v10 = vpop.f32.mrb[19].mxu0  ;;  %2376 = vmatmul.mubr.msk.f32.vlgmr.msra.gmra.mrb[10].mxu1 %vm26_vm0, %v1521_v9 }
 0xe3e   :  { %2523 = vmatpush3.bf16.xpose.msra.mxu1 %v2520_v48 }
 0xe3f   :  { %2525 = vmatprep.subr.bf16.mxu1 %v2524_v50 }
 0xe46   :  { %2527 = vmatpush3.bf16.xpose.msra.mxu1 %v2524_v50 }
 0xf10   :  { %v2377_v12 = vpop.f32.mrb[10].mxu1 }
 0xf11   :  { %v1623_v29 = vadd.f32 %v2377_v12, %v1543_v11  ;;  %v1617_v16 = vpop.f32.mrb[11].mxu1 }
 0xf12   :  { %v1618_v19 = vadd.f32 %v1617_v16, %v1543_v11 }
 0xf13   :  { %v3139_v18 = vadd.f32 %v1623_v29, %v3002_v33  ;;  %v1935_v33 = vrot.slane %v2973_v42, 1 }
 0xf14   :  { %v3142_v59 = vadd.f32 %v1618_v19, %v3005_v31  ;;  %v1975_v31 = vrot.slane %v2994_v20, 3  ;;  %v2103_v19 = vld [vmem:[%s3293_s1 + $0x98] ss:$0 sm:$0xff]  ;;  %s2718_s1 = smov [#allocation2]  }
 0xf15   :  { %v1631_v5 = vsel %vm26_vm0, %v3139_v18, 0.0 }
 0xf16   :  { %1632 = vadd.xlane.f32.xlu1 %v1631_v5  ;;  %v1628_v24 = vsel %vm26_vm0, %v3142_v59, 0.0 }
 0xf17   :  { %1629 = vadd.xlane.f32.xlu0 %v1628_v24 }
 0xf27   :  { %1982 = vrot.lane.b32.xlu1 %v1981_v25, %s2712_s10 }
 0xf2b   :  { %1986 = vrot.lane.b32.xlu1 %v1985_v26, %s2717_s15 }
 0xf2f   :  { %1936 = vrot.lane.b32.xlu1 %v1935_v33, %s2712_s10 }
 0xf33   :  { %1976 = vrot.lane.b32.xlu1 %v1975_v31, %s2714_s14 }
 0xf37   :  { %1954 = vrot.lane.b32.xlu1 %v1953_v30, %s2717_s15 }
 0xfa3   :  { %v1633_v32 = vpop.xlane.xlu1 %1632 }
 0xfa4   :  { %v1635_v35 = vmul.f32 0.03125, %v1633_v32  ;;  %v1630_v2 = vpop.xlane.xlu0 %1629 }
 0xfa5   :  { %v1634_v34 = vmul.f32 0.03125, %v1630_v2 }
 0xfa6   :  { %v1637_v51 = vsub.f32 %v3139_v18, %v1635_v35 }
 0xfa7   :  { %v1636_v53 = vsub.f32 %v3142_v59, %v1634_v34 }
 0xfa8   :  { %v1639_v7 = vmul.f32 %v1637_v51, %v1637_v51 }
 0xfa9   :  { %v1638_v55 = vmul.f32 %v1636_v53, %v1636_v53 }
 0xfaa   :  { %v1643_v21 = vsel %vm26_vm0, %v1639_v7, 0.0  ;;  %v1943_v7 = vrot.slane %v2973_v42, 3 }
 0xfab   :  { %v1640_v22 = vsel %vm26_vm0, %v1638_v55, 0.0 }
 0xfac   :  { %1641 = vadd.xlane.f32.xlu0 %v1640_v22 }
 0xfb0   :  { %1644 = vadd.xlane.f32.xlu0 %v1643_v21 }
 0xfc6   :  { %1968 = vrot.lane.b32.xlu0 %v1967_v36, %s2712_s10  ;;  %v1957_v36 = vrot.slane %v2973_v42, 7 }
 0xfca   :  { %1972 = vrot.lane.b32.xlu0 %v1971_v14, %s2717_s15  ;;  %v1983_v14 = vpop.permute.xlu1 %1982 }
 0xfce   :  { %1950 = vrot.lane.b32.xlu0 %v1949_v1, %s2712_s10  ;;  %v1987_v4 = vpop.permute.xlu1 %1986 }
 0xfd2   :  { %1990 = vrot.lane.b32.xlu0 %v1989_v37, %s2714_s14  ;;  %v1937_v0 = vpop.permute.xlu1 %1936 }
 0xfd6   :  { %1940 = vrot.lane.b32.xlu0 %v1939_v47, %s2717_s15  ;;  %v1977_v17 = vpop.permute.xlu1 %1976 }
 0xfda   :  { %v1955_v57 = vpop.permute.xlu1 %1954 }
0x1039   :  { %v1642_v58 = vpop.xlane.xlu0 %1641 }
0x103a   :  { %v1646_v52 = vmul.f32 0.03125, %v1642_v58 }
0x103c   :  { %v1648_v61 = vadd.f32 1e-05, %v1646_v52 }
0x103d   :  { %v1645_v54 = vpop.xlane.xlu0 %1644 }
0x103e   :  { %2660 = vrsqrt.f32 %v1648_v61  ;;  %v1647_v62 = vmul.f32 0.03125, %v1645_v54 }
0x1040   :  { %v1649_v60 = vadd.f32 1e-05, %v1647_v62 }
0x1041   :  { %v1969_v1 = vpop.permute.xlu0 %1968 }
0x1042   :  { %2662 = vrsqrt.f32 %v1649_v60 }
0x1045   :  { %v1973_v15 = vpop.permute.xlu0 %1972 }
0x1048   :  { %v2661_v38 = vpop.eup %2660 }
0x1049   :  { %v1652_v39 = vmul.f32 %v2661_v38, %v1636_v53  ;;  %v1951_v56 = vpop.permute.xlu0 %1950  ;;  %v1979_v38 = vrot.slane %v2994_v20, 4 }
0x104b   :  { %v1658_v43 = vmul.f32 %v1657_v6, %v1652_v39 }
0x104c   :  { %v2663_v45 = vpop.eup %2662 }
0x104d   :  { %v1653_v28 = vmul.f32 %v2663_v45, %v1637_v51  ;;  %v1664_v8 = vadd.f32 %v1663_v27, %v1658_v43  ;;  %v1991_v37 = vpop.permute.xlu0 %1990  ;;  %v1993_v45 = vsel %vm26_vm0, %v2994_v20, %v1969_v1  ;;  %v1961_v20 = vsel %vm26_vm0, %v2973_v42, %v1937_v0 }
0x104f   :  { %v1659_v13 = vmul.f32 %v1657_v6, %v1653_v28  ;;  %2386 = vmatprep.mubr.msk.f32.mxu0 %vm26_vm0, %v1664_v8 }
0x1051   :  { %v1665_v9 = vadd.f32 %v1663_v27, %v1659_v13  ;;  %v1941_v40 = vpop.permute.xlu0 %1940 }
0x1053   :  { %2387 = vmatmul.mubr.msk.f32.vlgmr.msra.gmra.mrb[20].mxu0 %vm26_vm0, %v1665_v9  ;;  %v1996_v9 = vsel %vm26_vm0, %v1979_v38, %v1983_v14 }
0x1126   :  { %v2388_v10 = vpop.f32.mrb[20].mxu0 }
0x1127   :  { %v1760_v11 = vadd.f32 %v2388_v10, %v2100_v41  ;;  %v1754_v12 = vpop.f32.mrb[21].mxu0  ;;  %v1947_v10 = vrot.slane %v2973_v42, 4 }
0x1128   :  { %v1755_v29 = vadd.f32 %v2100_v41, %v1754_v12  ;;  %v1994_v41 = vsel %vm1874_vm4, %v1993_v45, %v1973_v15 }
0x1129   :  { %v1764_v44 = vmax.f32 %v1760_v11, 0.0  ;;  %v1997_v11 = vsel %vm1874_vm4, %v1996_v9, %v1987_v4 }
0x112a   :  { %v1763_v16 = vmax.f32 %v1755_v29, 0.0 }
0x112c   :  { %2397 = vmatprep.mubr.f32.mxu1 %v1763_v16 }
0x112d   :  { %2398 = vmatmul.mubr.f32.vlgmr.msra.gmra.mrb[12].mxu1 %v1764_v44 }
0x1200   :  { %v2399_v5 = vpop.f32.mrb[12].mxu1 }
0x1201   :  { %v1841_v24 = vadd.f32 %v2399_v5, %v2103_v19  ;;  %v1835_v25 = vpop.f32.mrb[13].mxu1 }
0x1202   :  { %v1836_v33 = vadd.f32 %v2103_v19, %v1835_v25  ;;  %v1995_v25 = vsel %vm1876_vm5, %v1994_v41, %v1977_v17 }
0x1203   :  { %v1845_v26 = vadd.f32 %v1841_v24, %v3139_v18 }
0x1204   :  { %v3212_v32 = vadd.f32 %v1836_v33, %v3142_v59  ;;  %v1998_v33 = vsel %vm1876_vm5, %v1997_v11, %v1991_v37 }
0x1205   :  { %v1886_v31 = vrot.slane %v1845_v26, 2  ;;  %v1882_v30 = vrot.slane %v1845_v26, 1  ;;  %v1904_v35 = vrot.slane %v1845_v26, 7  ;;  %v1896_v2 = vrot.slane %v1845_v26, 5 }
0x1206   :  { %v1900_v34 = vrot.slane %v1845_v26, 6  ;;  %v1847_v51 = vrot.slane %v3212_v32, 1  ;;  %v1890_v18 = vrot.slane %v1845_v26, 3  ;;  %v1861_v53 = vrot.slane %v3212_v32, 5 }
0x1207   :  { %1887 = vrot.lane.b32.xlu0 %v1886_v31, %s2717_s15  ;;  %1883 = vrot.lane.b32.xlu1 %v1882_v30, %s2712_s10  ;;  %v1851_v59 = vrot.slane %v3212_v32, 2  ;;  %v1855_v55 = vrot.slane %v3212_v32, 3  ;;  %v1865_v22 = vrot.slane %v3212_v32, 6  ;;  %v1869_v21 = vrot.slane %v3212_v32, 7 }
0x1208   :  { %v1894_v61 = vrot.slane %v1845_v26, 4  ;;  %v1859_v13 = vrot.slane %v3212_v32, 4  ;;  %v1962_v30 = vsel %vm1874_vm4, %v1961_v20, %v1941_v40 }
0x120b   :  { %1905 = vrot.lane.b32.xlu0 %v1904_v35, %s2714_s14  ;;  %1897 = vrot.lane.b32.xlu1 %v1896_v2, %s2712_s10 }
0x120f   :  { %1901 = vrot.lane.b32.xlu1 %v1900_v34, %s2717_s15  ;;  %1848 = vrot.lane.b32.xlu0 %v1847_v51, %s2712_s10  ;;  %v2001_v34 = vrot.slane %v1995_v25, 7  ;;  %v2002_v51 = vrot.slane %v1998_v33, 7 }
0x1213   :  { %1891 = vrot.lane.b32.xlu1 %v1890_v18, %s2714_s14  ;;  %1862 = vrot.lane.b32.xlu0 %v1861_v53, %s2712_s10  ;;  %s2025_s10 = sshll.u32 %s2718_s1, 4  ;;  %s2026_s10 = int_to_ptr.vmem [resolvable:$true] %s2025_s10 }
0x1214   :  { %s2664_s20 = scalar_lea.vmem %s2026_s10, 64  ;;  %p2669_p1 = scmp.lt.s32.totalorder %s2026_s10, %s2026_s10 }
0x1215   :  { %p2665_p0 = scmp.ne.s32.totalorder %s2026_s10, %s2664_s20  ;;  %p2670_p2 = scmp.lt.s32.totalorder %s2664_s20, %s2664_s20 }
0x1217   :  { %1852 = vrot.lane.b32.xlu1 %v1851_v59, %s2717_s15  ;;  %1856 = vrot.lane.b32.xlu0 %v1855_v55, %s2714_s14  ;;  %p2671_p3 = por %p2670_p2, %p2669_p1 }
0x1219   :  { %p2672_p4 = pnand %p2671_p3, %p2665_p0 }
0x121b   :  { %1866 = vrot.lane.b32.xlu1 %v1865_v22, %s2717_s15  ;;  %1944 = vrot.lane.b32.xlu0 %v1943_v7, %s2714_s14 }
0x121f   :  { %1870 = vrot.lane.b32.xlu1 %v1869_v21, %s2714_s14 }
0x1223   :  { %1958 = vrot.lane.b32.xlu1 %v1957_v36, %s2714_s14  ;;  %s2719_s14 = smov [#allocation4]  }
0x1224   :  { %s2035_s15 = sshll.u32 %s2719_s14, 4  ;;  %s2036_s15 = int_to_ptr.vmem [resolvable:$true] %s2035_s15 }
0x1279   :  { %v1884_v46 = vpop.permute.xlu1 %1883  ;;  %v1888_v63 = vpop.permute.xlu0 %1887 }
0x127a   :  { %v1908_v62 = vsel %vm26_vm0, %v1845_v26, %v1884_v46  ;;  %v1964_v26 = vsel %vm26_vm0, %v1947_v10, %v1951_v56 }
0x127b   :  { %v1909_v39 = vsel %vm1874_vm4, %v1908_v62, %v1888_v63  ;;  %v1965_v53 = vsel %vm1874_vm4, %v1964_v26, %v1955_v57 }
0x127d   :  { %v1898_v47 = vpop.permute.xlu1 %1897  ;;  %v1906_v48 = vpop.permute.xlu0 %1905 }
0x127e   :  { %v1911_v60 = vsel %vm26_vm0, %v1894_v61, %v1898_v47 }
0x1281   :  { %v1902_v49 = vpop.permute.xlu1 %1901  ;;  %v1849_v50 = vpop.permute.xlu0 %1848 }
0x1282   :  { %v1912_v23 = vsel %vm1874_vm4, %v1911_v60, %v1902_v49  ;;  %v1873_v6 = vsel %vm26_vm0, %v3212_v32, %v1849_v50 }
0x1283   :  { %v1913_v28 = vsel %vm1876_vm5, %v1912_v23, %v1906_v48 }
0x1284   :  { %v1917_v16 = vrot.slane %v1913_v28, 7 }
0x1285   :  { %v1892_v58 = vpop.permute.xlu1 %1891  ;;  %v1863_v52 = vpop.permute.xlu0 %1862 }
0x1286   :  { %v1910_v8 = vsel %vm1876_vm5, %v1909_v39, %v1892_v58  ;;  %v1878_v12 = vsel %vm26_vm0, %v1859_v13, %v1863_v52 }
0x1287   :  { %v1916_v44 = vrot.slane %v1910_v8, 7 }
0x1289   :  { %v1853_v54 = vpop.permute.xlu1 %1852  ;;  %v1857_v3 = vpop.permute.xlu0 %1856 }
0x128a   :  { %v1875_v27 = vsel %vm1874_vm4, %v1873_v6, %v1853_v54 }
0x128b   :  { %v1877_v29 = vsel %vm1876_vm5, %v1875_v27, %v1857_v3 }
0x128c   :  { %v1921_v42 = vsel %vm1920_vm6, %v1877_v29, %v1916_v44 }
0x128d   :  { %v1867_v43 = vpop.permute.xlu1 %1866  ;;  %v1945_v5 = vpop.permute.xlu0 %1944 }
0x128e   :  { %v1879_v19 = vsel %vm1874_vm4, %v1878_v12, %v1867_v43  ;;  %v1963_v35 = vsel %vm1876_vm5, %v1962_v30, %v1945_v5 }
0x1291   :  { %v1871_v24 = vpop.permute.xlu1 %1870 }
0x1292   :  { %v1880_v31 = vsel %vm1876_vm5, %v1879_v19, %v1871_v24 }
0x1293   :  { %v1922_v32 = vsel %vm1920_vm6, %v1880_v31, %v1917_v16 }
0x1294   :  { %v1925_v2 = vcombine.low %v1921_v42, %v1922_v32 }
0x1295   :  { %v1959_v18 = vpop.permute.xlu1 %1958 }
0x1296   :  { %v1966_v59 = vsel %vm1876_vm5, %v1965_v53, %v1959_v18  ;;  %2104 = vst.sshfl [vmem:[#allocation2] sm:$0x33 pattern:$0x76325410] %v1925_v2 }
0x1297   :  { %2675 = shalt.err (!%p2672_p4)
}
0x1298   :  { %s2676_s23 = scalar_lea.hbm %s3295_s3, 64 }
0x1299   :  { %p2677_p5 = scmp.ne.s32.totalorder %s3295_s3, %s2676_s23  ;;  %p2680_p6 = scmp.lt.u32.totalorder %s2676_s23, %s3295_s3 }
0x129b   :  { %p2682_p7 = pnand %p2680_p6, %p2677_p5 }
0x129d   :  { %2685 = shalt.err (!%p2682_p7)
}
0x129e   :  { %2028 = dma.vmem_to_hbm [thread:$0]  %s2026_s10, 64, %s3295_s3, [#allocation3]   ;;  %v2005_v55 = vsel %vm1920_vm6, %v1963_v35, %v2001_v34  ;;  %v2006_v22 = vsel %vm1920_vm6, %v1966_v59, %v2002_v51 }
0x129f   :  { %v2009_v7 = vcombine.low %v2005_v55, %v2006_v22  ;;  %s2686_s30 = scalar_lea.vmem %s2036_s15, 64  ;;  %p2691_p9 = scmp.lt.s32.totalorder %s2036_s15, %s2036_s15 }
0x12a0   :  { %p2687_p8 = scmp.ne.s32.totalorder %s2036_s15, %s2686_s30  ;;  %p2692_p10 = scmp.lt.s32.totalorder %s2686_s30, %s2686_s30 }
0x12a1   :  { %2105 = vst.sshfl [vmem:[#allocation4] sm:$0x33 pattern:$0x76325410] %v2009_v7 }
0x12a2   :  { %p2693_p11 = por %p2692_p10, %p2691_p9 }
0x12a4   :  { %p2694_p12 = pnand %p2693_p11, %p2687_p8 }
0x12a6   :  { %2697 = shalt.err (!%p2694_p12)
}
0x12a7   :  { %s2698_s7 = scalar_lea.hbm %s3296_s4, 64 }
0x12a8   :  { %p2699_p13 = scmp.ne.s32.totalorder %s3296_s4, %s2698_s7  ;;  %p2702_p0 = scmp.lt.u32.totalorder %s2698_s7, %s3296_s4 }
0x12aa   :  { %p2704_p1 = pnand %p2702_p0, %p2699_p13 }
0x12ac   :  { %2707 = shalt.err (!%p2704_p1)
}
0x12ad   :  { %2038 = dma.vmem_to_hbm [thread:$0]  %s2036_s15, 64, %s3296_s4, [#allocation5]  }
0x12ae   :  { %2708 = dma.done.wait [#allocation3], 64  }
0x12af   :  { %2709 = vsyncadd [#allocation3], 4294967232 }
0x12b0   :  { %2710 = dma.done.wait [#allocation5], 64  }
0x12b1   :  { %2711 = vsyncadd [#allocation5], 4294967232 }
0x12b2   :  { %2045 = vsyncpa [#allocation3], 1 }
0x12b3   :  { %2046 = vsyncpa [#allocation5], 1 }

</bundles_post_ra>
